<compile_context>
chip_gen: v7x
topology: tpu7x:2x2x1
jax: 0.10.0
libtpu: 0.0.40
codegen_flags: <defaults>
</compile_context>

<pallas_src>
import functools

import numpy as np
import jax
import jax.numpy as jnp
from jax.experimental import pallas as pl
from jax.experimental.pallas import tpu as pltpu

LANES = 128  # lane width of every activation row / conv output row


# ---------------------------------------------------------------------------
# Parameters (deterministic synthetic, PyTorch-shaped)
# ---------------------------------------------------------------------------

def _reflect(i, n):
    """PyTorch ReflectionPad2d index mapping."""
    if i < 0:
        return -i
    if i >= n:
        return 2 * n - 2 - i
    return i


def init_style_encoder_params(key, *, n_downsample, input_dim, dim, c_dim):
    keys = iter(jax.random.split(key, 64))

    def conv_p(cin, cout, k):
        w = 0.2 * jax.random.normal(next(keys), (cout, cin, k, k), jnp.float32)
        b = 0.2 * jax.random.normal(next(keys), (cout,), jnp.float32)
        return w, b

    layers = [(input_dim, dim, 7, 1, 3)]
    d = dim
    for _ in range(2):
        layers.append((d, 2 * d, 4, 2, 1))
        d *= 2
    for _ in range(n_downsample - 2):
        layers.append((d, d, 4, 2, 1))

    return {
        "conv_cfg": [(k, s, p) for (_, _, k, s, p) in layers],
        "convs": [conv_p(cin, cout, k) for (cin, cout, k, _, _) in layers],
        # nn.Linear weights are (out_features, in_features)
        "fc_w": 0.2 * jax.random.normal(next(keys), (c_dim, d), jnp.float32),
        "fc_b": 0.2 * jax.random.normal(next(keys), (c_dim,), jnp.float32),
        "fcVar_w": 0.2 * jax.random.normal(next(keys), (c_dim, d), jnp.float32),
        "fcVar_b": 0.2 * jax.random.normal(next(keys), (c_dim,), jnp.float32),
        "output_dim": d,
    }


# ---------------------------------------------------------------------------
# One-time parameter packing (all layout plumbing hoisted out of the hot path)
# ---------------------------------------------------------------------------

def _row_selectors(n_img, hin, hout, k, stride, pad):
    """Per-kh 0/1 row selectors, block-diagonal over the stacked batch rows."""
    R = np.zeros((k, n_img * hout, n_img * hin), np.float32)
    for kh in range(k):
        for n in range(n_img):
            for ho in range(hout):
                hs = _reflect(stride * ho + kh - pad, hin)
                R[kh, n * hout + ho, n * hin + hs] = 1.0
    return R


def _col_folded_weight(w, win, wout, stride, pad):
    """Fold the column (W-axis) reflect gather into the conv weight.

    Input activation lane layout:  w_idx * cin + ci   (cin = w.shape[1])
    Output activation lane layout: wo    * cout + co
    Returns M of shape (k*128, 128): contraction block kh lives at rows
    [kh*128, kh*128+128).  Summation over kw handles reflect-duplicated taps.
    """
    cout, cin, k, _ = w.shape
    M = np.zeros((k * LANES, LANES), np.float32)
    for kh in range(k):
        for kw in range(k):
            for wo in range(wout):
                ws = _reflect(stride * wo + kw - pad, win)
                rows = kh * LANES + ws * cin + np.arange(cin)
                cols = wo * cout + np.arange(cout)
                M[np.ix_(rows, cols)] += w[:, :, kh, kw].T      # (cin, cout)
    return M


def _bias_row(b, wout):
    cout = b.shape[0]
    assert wout * cout == LANES
    return np.tile(np.asarray(b, np.float32), wout).reshape(1, LANES)


def pack_params(params, N, H, W):
    cfg = params["conv_cfg"]
    convs = [(np.asarray(w, np.float32), np.asarray(b, np.float32))
             for (w, b) in params["convs"]]
    assert (len(convs) == 3 and cfg[0] == (7, 1, 3)
            and cfg[1] == (4, 2, 1) and cfg[2] == (4, 2, 1)), \
        "fused kernel is specialized to the 3-conv StyleEncoder instantiation"
    # TODO(synk): n_downsample > 2 (extra stride-2 blocks) and use_map=True
    #             (mapping MLP) are not exercised by this instantiation.

    (w1, b1), (w2, b2), (w3, b3) = convs
    cin, c1, c2, c3 = w1.shape[1], w1.shape[0], w2.shape[0], w3.shape[0]
    H1, W1 = H, W
    H2, W2 = H1 // 2, W1 // 2
    H3, W3 = H2 // 2, W2 // 2
    # The fused lane layout needs each conv output row to fill exactly 128 lanes.
    assert W * cin <= LANES and W1 * c1 == LANES and W2 * c2 == LANES \
        and W3 * c3 == LANES, "requires W*dim == 128 at every stage (16x16, dim=8)"

    r1 = _row_selectors(N, H1, H1, 7, 1, 3)
    r2 = _row_selectors(N, H1, H2, 4, 2, 1)
    r3 = _row_selectors(N, H2, H3, 4, 2, 1)

    m1 = _col_folded_weight(w1, W1, W1, 1, 3)
    m2 = _col_folded_weight(w2, W1, W2, 2, 1)
    m3 = _col_folded_weight(w3, W2, W3, 2, 1)

    # Row part of the average pool (per-image row sums) ...
    pool = np.zeros((N, N * H3), np.float32)
    for n in range(N):
        pool[n, n * H3:(n + 1) * H3] = 1.0
    # ... lane part of the pool + 1/(H3*W3) + fc/fcVar fused into one head weight.
    fc_w = np.asarray(params["fc_w"], np.float32)
    fcv_w = np.asarray(params["fcVar_w"], np.float32)
    wcat = np.concatenate([fc_w.T, fcv_w.T], axis=1)            # (c3, 2*c_dim)
    nout = wcat.shape[1]
    whead = np.zeros((LANES, LANES), np.float32)                # lane-dense head
    for wo in range(W3):
        whead[wo * c3:(wo + 1) * c3, :nout] = wcat / float(H3 * W3)
    bhead = np.zeros((1, LANES), np.float32)
    bhead[0, :nout] = np.concatenate(
        [np.asarray(params["fc_b"]), np.asarray(params["fcVar_b"])])

    bf = jnp.bfloat16
    return {
        "r1": jnp.asarray(r1, bf), "m1": jnp.asarray(m1, bf),
        "b1": jnp.asarray(_bias_row(b1, W1)),
        "r2": jnp.asarray(r2, bf), "m2": jnp.asarray(m2, bf),
        "b2": jnp.asarray(_bias_row(b2, W2)),
        "r3": jnp.asarray(r3, bf), "m3": jnp.asarray(m3, bf),
        "b3": jnp.asarray(_bias_row(b3, W3)),
        "pool": jnp.asarray(pool, jnp.float32),
        "whead": jnp.asarray(whead, jnp.float32),
        "bhead": jnp.asarray(bhead, jnp.float32),
    }


# ---------------------------------------------------------------------------
# Fused Pallas kernel: conv1 + conv2 + conv3 + avgpool + (fc | fcVar)
# ---------------------------------------------------------------------------

def _make_style_kernel(k1, k2, k3):
    def kernel(x_ref, r1_ref, m1_ref, b1_ref,
               r2_ref, m2_ref, b2_ref,
               r3_ref, m3_ref, b3_ref,
               pool_ref, whead_ref, bhead_ref, out_ref):
        f32, bf16 = jnp.float32, jnp.bfloat16

        def conv(act, r_ref, m_ref, b_ref, k):
            # Row gathers: tiny exact 0/1 selector matmuls (one per kh), then a
            # lane-aligned concat and ONE long-K MXU matmul; the column gather
            # (reflect borders included) is already folded into m_ref.
            taps = [jnp.dot(r_ref[kh], act, preferred_element_type=f32).astype(bf16)
                    for kh in range(k)]
            g = jnp.concatenate(taps, axis=1)                    # (rows, k*128)
            pre = jnp.dot(g, m_ref[...], preferred_element_type=f32) + b_ref[...]
            return jnp.maximum(pre, 0.0)

        a1 = conv(x_ref[...], r1_ref, m1_ref, b1_ref, k1).astype(bf16)  # (N*H,   128)
        a2 = conv(a1, r2_ref, m2_ref, b2_ref, k2).astype(bf16)          # (N*H/2, 128)
        a3 = conv(a2, r3_ref, m3_ref, b3_ref, k3)                       # (N*H/4, 128) f32

        # Average pool + fused fc/fcVar head (1/(H3*W3) folded into whead).
        rowsum = jnp.dot(pool_ref[...], a3, preferred_element_type=f32)  # (N, 128)
        out = jnp.dot(rowsum, whead_ref[...], preferred_element_type=f32) + bhead_ref[...]
        out_ref[...] = out                                               # lane-dense (N,128)

    return kernel


# ---------------------------------------------------------------------------
# Forward wrapper
# ---------------------------------------------------------------------------

@functools.partial(jax.jit, static_argnames=("c_dim",))
def style_encoder_forward(x_nchw, packed, c_dim=8):
    """Returns (fc, fcVar) exactly like StyleEncoder.forward (use_map=False)."""
    N, cin, H, W = x_nchw.shape
    # Tiny layout plumbing only: NCHW -> rows (n*H + h), lanes (w*cin + c), pad to 128.
    x = jnp.transpose(x_nchw, (0, 2, 3, 1)).reshape(N * H, W * cin)
    x = jnp.pad(x, ((0, 0), (0, LANES - W * cin))).astype(jnp.bfloat16)

    k1, k2, k3 = packed["r1"].shape[0], packed["r2"].shape[0], packed["r3"].shape[0]
    kernel = _make_style_kernel(k1=k1, k2=k2, k3=k3)

    out = pl.pallas_call(
        kernel,
        out_shape=jax.ShapeDtypeStruct((N, LANES), jnp.float32),
        grid=(1,),                                   # whole batch in one step
        in_specs=[
            pl.BlockSpec((N * H, LANES), lambda i: (0, 0)),
            pl.BlockSpec(packed["r1"].shape, lambda i: (0, 0, 0)),
            pl.BlockSpec(packed["m1"].shape, lambda i: (0, 0)),
            pl.BlockSpec((1, LANES), lambda i: (0, 0)),
            pl.BlockSpec(packed["r2"].shape, lambda i: (0, 0, 0)),
            pl.BlockSpec(packed["m2"].shape, lambda i: (0, 0)),
            pl.BlockSpec((1, LANES), lambda i: (0, 0)),
            pl.BlockSpec(packed["r3"].shape, lambda i: (0, 0, 0)),
            pl.BlockSpec(packed["m3"].shape, lambda i: (0, 0)),
            pl.BlockSpec((1, LANES), lambda i: (0, 0)),
            pl.BlockSpec(packed["pool"].shape, lambda i: (0, 0)),
            pl.BlockSpec(packed["whead"].shape, lambda i: (0, 0)),
            pl.BlockSpec((1, LANES), lambda i: (0, 0)),
        ],
        out_specs=pl.BlockSpec((N, LANES), lambda i: (0, 0)),
        compiler_params=pltpu.CompilerParams(dimension_semantics=("arbitrary",)),
    )(x, packed["r1"], packed["m1"], packed["b1"],
      packed["r2"], packed["m2"], packed["b2"],
      packed["r3"], packed["m3"], packed["b3"],
      packed["pool"], packed["whead"], packed["bhead"])

    return out[:, :c_dim], out[:, c_dim:2 * c_dim]


# ---------------------------------------------------------------------------
# Pure-JAX f32 reference (sanity check only)
# ---------------------------------------------------------------------------

def _reference_forward(x_nchw, params):
    x = jnp.transpose(x_nchw, (0, 2, 3, 1)).astype(jnp.float32)
    for (w, b), (k, s, p) in zip(params["convs"], params["conv_cfg"]):
        x = jnp.pad(x, ((0, 0), (p, p), (p, p), (0, 0)), mode="reflect")
        x = jax.lax.conv_general_dilated(
            x, jnp.transpose(w, (2, 3, 1, 0)), window_strides=(s, s),
            padding="VALID", dimension_numbers=("NHWC", "HWIO", "NHWC"),
            precision=jax.lax.Precision.HIGHEST)
        x = jax.nn.relu(x + b.reshape(1, 1, 1, -1))
    feats = jnp.mean(x, axis=(1, 2))
    fc = feats @ params["fc_w"].T + params["fc_b"]
    fcVar = feats @ params["fcVar_w"].T + params["fcVar_b"]
    return fc, fcVar


# ---------------------------------------------------------------------------
# Main
# ---------------------------------------------------------------------------

if __name__ == "__main__":
    n_downsample, input_dim, dim, c_dim = 2, 3, 8, 8

    key = jax.random.PRNGKey(0)
    k_param, k_x = jax.random.split(key)

    params = init_style_encoder_params(
        k_param, n_downsample=n_downsample, input_dim=input_dim, dim=dim, c_dim=c_dim)
    x = jax.random.normal(k_x, (2, input_dim, 16, 16), jnp.float32)   # NCHW like PyTorch

    packed = pack_params(params, N=2, H=16, W=16)

    fc, fcVar = style_encoder_forward(x, packed, c_dim=c_dim)
    jax.block_until_ready((fc, fcVar))
    assert fc.shape == (2, c_dim) and fcVar.shape == (2, c_dim)

    # Sanity check vs f32 reference (kernel uses bf16 MXU operands, f32 accumulate).
    fc_ref, fcVar_ref = _reference_forward(x, params)
    ref = jnp.concatenate([fc_ref, fcVar_ref], axis=1)
    got = jnp.concatenate([fc, fcVar], axis=1)
    rel_err = float(jnp.max(jnp.abs(got - ref))) / (float(jnp.max(jnp.abs(ref))) + 1e-6)
    assert rel_err < 0.08, f"mismatch vs reference: rel_err={rel_err:.4f}"

    print("KERNEL_OK")
</pallas_src>

<mosaic_0001>
module attributes {stable_mosaic.version = 11 : i64} {
  func.func @kernel(%arg0: i32, %arg1: memref<32x128xbf16, #tpu.memory_space<vmem>>, %arg2: memref<7x32x32xbf16, #tpu.memory_space<vmem>>, %arg3: memref<896x128xbf16, #tpu.memory_space<vmem>>, %arg4: memref<1x128xf32, #tpu.memory_space<vmem>>, %arg5: memref<4x16x32xbf16, #tpu.memory_space<vmem>>, %arg6: memref<512x128xbf16, #tpu.memory_space<vmem>>, %arg7: memref<1x128xf32, #tpu.memory_space<vmem>>, %arg8: memref<4x8x16xbf16, #tpu.memory_space<vmem>>, %arg9: memref<512x128xbf16, #tpu.memory_space<vmem>>, %arg10: memref<1x128xf32, #tpu.memory_space<vmem>>, %arg11: memref<2x8xf32, #tpu.memory_space<vmem>>, %arg12: memref<128x128xf32, #tpu.memory_space<vmem>>, %arg13: memref<1x128xf32, #tpu.memory_space<vmem>>, %arg14: memref<2x128xf32, #tpu.memory_space<vmem>>) attributes {dimension_semantics = [#tpu.dimension_semantics<arbitrary>], iteration_bounds = array<i64: 1>, scalar_prefetch = 0 : i64, scratch_operands = 0 : i64, tpu.core_type = #tpu.core_type<tc>, window_params = [{pipeline_mode = #tpu.pipeline_mode<synchronous>, transform_indices = @transform_0, window_bounds = array<i64: 32, 128>}, {pipeline_mode = #tpu.pipeline_mode<synchronous>, transform_indices = @transform_1, window_bounds = array<i64: 7, 32, 32>}, {pipeline_mode = #tpu.pipeline_mode<synchronous>, transform_indices = @transform_2, window_bounds = array<i64: 896, 128>}, {pipeline_mode = #tpu.pipeline_mode<synchronous>, transform_indices = @transform_3, window_bounds = array<i64: 1, 128>}, {pipeline_mode = #tpu.pipeline_mode<synchronous>, transform_indices = @transform_4, window_bounds = array<i64: 4, 16, 32>}, {pipeline_mode = #tpu.pipeline_mode<synchronous>, transform_indices = @transform_5, window_bounds = array<i64: 512, 128>}, {pipeline_mode = #tpu.pipeline_mode<synchronous>, transform_indices = @transform_6, window_bounds = array<i64: 1, 128>}, {pipeline_mode = #tpu.pipeline_mode<synchronous>, transform_indices = @transform_7, window_bounds = array<i64: 4, 8, 16>}, {pipeline_mode = #tpu.pipeline_mode<synchronous>, transform_indices = @transform_8, window_bounds = array<i64: 512, 128>}, {pipeline_mode = #tpu.pipeline_mode<synchronous>, transform_indices = @transform_9, window_bounds = array<i64: 1, 128>}, {pipeline_mode = #tpu.pipeline_mode<synchronous>, transform_indices = @transform_10, window_bounds = array<i64: 2, 8>}, {pipeline_mode = #tpu.pipeline_mode<synchronous>, transform_indices = @transform_11, window_bounds = array<i64: 128, 128>}, {pipeline_mode = #tpu.pipeline_mode<synchronous>, transform_indices = @transform_12, window_bounds = array<i64: 1, 128>}, {pipeline_mode = #tpu.pipeline_mode<synchronous>, transform_indices = @transform_13, window_bounds = array<i64: 2, 128>}]} {
    %c0 = arith.constant 0 : index
    %c0_0 = arith.constant 0 : index
    %0 = vector.load %arg1[%c0, %c0_0] : memref<32x128xbf16, #tpu.memory_space<vmem>>, vector<32x128xbf16>
    %c0_1 = arith.constant 0 : index
    %c0_2 = arith.constant 0 : index
    %c0_3 = arith.constant 0 : index
    %1 = vector.load %arg2[%c0_1, %c0_2, %c0_3] : memref<7x32x32xbf16, #tpu.memory_space<vmem>>, vector<1x32x32xbf16>
    %2 = vector.shape_cast %1 : vector<1x32x32xbf16> to vector<32x32xbf16>
    %cst = arith.constant dense<0.000000e+00> : vector<32x128xf32>
    %3 = tpu.matmul %2, %0, %cst {dimension_numbers = #tpu.dot_dimension_numbers<[1], [0], [0], [1], [0, 0, 1, 1], [], []>} : vector<32x32xbf16>, vector<32x128xbf16>, vector<32x128xf32> -> vector<32x128xf32>
    %4 = arith.truncf %3 : vector<32x128xf32> to vector<32x128xbf16>
    %c1 = arith.constant 1 : index
    %c0_4 = arith.constant 0 : index
    %c0_5 = arith.constant 0 : index
    %5 = vector.load %arg2[%c1, %c0_4, %c0_5] : memref<7x32x32xbf16, #tpu.memory_space<vmem>>, vector<1x32x32xbf16>
    %6 = vector.shape_cast %5 : vector<1x32x32xbf16> to vector<32x32xbf16>
    %cst_6 = arith.constant dense<0.000000e+00> : vector<32x128xf32>
    %7 = tpu.matmul %6, %0, %cst_6 {dimension_numbers = #tpu.dot_dimension_numbers<[1], [0], [0], [1], [0, 0, 1, 1], [], []>} : vector<32x32xbf16>, vector<32x128xbf16>, vector<32x128xf32> -> vector<32x128xf32>
    %8 = arith.truncf %7 : vector<32x128xf32> to vector<32x128xbf16>
    %c2 = arith.constant 2 : index
    %c0_7 = arith.constant 0 : index
    %c0_8 = arith.constant 0 : index
    %9 = vector.load %arg2[%c2, %c0_7, %c0_8] : memref<7x32x32xbf16, #tpu.memory_space<vmem>>, vector<1x32x32xbf16>
    %10 = vector.shape_cast %9 : vector<1x32x32xbf16> to vector<32x32xbf16>
    %cst_9 = arith.constant dense<0.000000e+00> : vector<32x128xf32>
    %11 = tpu.matmul %10, %0, %cst_9 {dimension_numbers = #tpu.dot_dimension_numbers<[1], [0], [0], [1], [0, 0, 1, 1], [], []>} : vector<32x32xbf16>, vector<32x128xbf16>, vector<32x128xf32> -> vector<32x128xf32>
    %12 = arith.truncf %11 : vector<32x128xf32> to vector<32x128xbf16>
    %c3 = arith.constant 3 : index
    %c0_10 = arith.constant 0 : index
    %c0_11 = arith.constant 0 : index
    %13 = vector.load %arg2[%c3, %c0_10, %c0_11] : memref<7x32x32xbf16, #tpu.memory_space<vmem>>, vector<1x32x32xbf16>
    %14 = vector.shape_cast %13 : vector<1x32x32xbf16> to vector<32x32xbf16>
    %cst_12 = arith.constant dense<0.000000e+00> : vector<32x128xf32>
    %15 = tpu.matmul %14, %0, %cst_12 {dimension_numbers = #tpu.dot_dimension_numbers<[1], [0], [0], [1], [0, 0, 1, 1], [], []>} : vector<32x32xbf16>, vector<32x128xbf16>, vector<32x128xf32> -> vector<32x128xf32>
    %16 = arith.truncf %15 : vector<32x128xf32> to vector<32x128xbf16>
    %c4 = arith.constant 4 : index
    %c0_13 = arith.constant 0 : index
    %c0_14 = arith.constant 0 : index
    %17 = vector.load %arg2[%c4, %c0_13, %c0_14] : memref<7x32x32xbf16, #tpu.memory_space<vmem>>, vector<1x32x32xbf16>
    %18 = vector.shape_cast %17 : vector<1x32x32xbf16> to vector<32x32xbf16>
    %cst_15 = arith.constant dense<0.000000e+00> : vector<32x128xf32>
    %19 = tpu.matmul %18, %0, %cst_15 {dimension_numbers = #tpu.dot_dimension_numbers<[1], [0], [0], [1], [0, 0, 1, 1], [], []>} : vector<32x32xbf16>, vector<32x128xbf16>, vector<32x128xf32> -> vector<32x128xf32>
    %20 = arith.truncf %19 : vector<32x128xf32> to vector<32x128xbf16>
    %c5 = arith.constant 5 : index
    %c0_16 = arith.constant 0 : index
    %c0_17 = arith.constant 0 : index
    %21 = vector.load %arg2[%c5, %c0_16, %c0_17] : memref<7x32x32xbf16, #tpu.memory_space<vmem>>, vector<1x32x32xbf16>
    %22 = vector.shape_cast %21 : vector<1x32x32xbf16> to vector<32x32xbf16>
    %cst_18 = arith.constant dense<0.000000e+00> : vector<32x128xf32>
    %23 = tpu.matmul %22, %0, %cst_18 {dimension_numbers = #tpu.dot_dimension_numbers<[1], [0], [0], [1], [0, 0, 1, 1], [], []>} : vector<32x32xbf16>, vector<32x128xbf16>, vector<32x128xf32> -> vector<32x128xf32>
    %24 = arith.truncf %23 : vector<32x128xf32> to vector<32x128xbf16>
    %c6 = arith.constant 6 : index
    %c0_19 = arith.constant 0 : index
    %c0_20 = arith.constant 0 : index
    %25 = vector.load %arg2[%c6, %c0_19, %c0_20] : memref<7x32x32xbf16, #tpu.memory_space<vmem>>, vector<1x32x32xbf16>
    %26 = vector.shape_cast %25 : vector<1x32x32xbf16> to vector<32x32xbf16>
    %cst_21 = arith.constant dense<0.000000e+00> : vector<32x128xf32>
    %27 = tpu.matmul %26, %0, %cst_21 {dimension_numbers = #tpu.dot_dimension_numbers<[1], [0], [0], [1], [0, 0, 1, 1], [], []>} : vector<32x32xbf16>, vector<32x128xbf16>, vector<32x128xf32> -> vector<32x128xf32>
    %28 = arith.truncf %27 : vector<32x128xf32> to vector<32x128xbf16>
    %29 = tpu.concatenate %4, %8, %12, %16, %20, %24, %28 in 1 : vector<32x128xbf16>, vector<32x128xbf16>, vector<32x128xbf16>, vector<32x128xbf16>, vector<32x128xbf16>, vector<32x128xbf16>, vector<32x128xbf16> -> vector<32x896xbf16>
    %c0_22 = arith.constant 0 : index
    %c0_23 = arith.constant 0 : index
    %30 = vector.load %arg3[%c0_22, %c0_23] : memref<896x128xbf16, #tpu.memory_space<vmem>>, vector<896x128xbf16>
    %cst_24 = arith.constant dense<0.000000e+00> : vector<32x128xf32>
    %31 = tpu.matmul %29, %30, %cst_24 {dimension_numbers = #tpu.dot_dimension_numbers<[1], [0], [0], [1], [0, 0, 1, 1], [], []>} : vector<32x896xbf16>, vector<896x128xbf16>, vector<32x128xf32> -> vector<32x128xf32>
    %c0_25 = arith.constant 0 : index
    %c0_26 = arith.constant 0 : index
    %32 = vector.load %arg4[%c0_25, %c0_26] : memref<1x128xf32, #tpu.memory_space<vmem>>, vector<1x128xf32>
    %33 = vector.broadcast %32 : vector<1x128xf32> to vector<32x128xf32>
    %34 = arith.addf %31, %33 : vector<32x128xf32>
    %cst_27 = arith.constant 0.000000e+00 : f32
    %35 = vector.broadcast %cst_27 : f32 to vector<32x128xf32>
    %36 = arith.maximumf %34, %35 : vector<32x128xf32>
    %37 = arith.truncf %36 : vector<32x128xf32> to vector<32x128xbf16>
    %c0_28 = arith.constant 0 : index
    %c0_29 = arith.constant 0 : index
    %c0_30 = arith.constant 0 : index
    %38 = vector.load %arg5[%c0_28, %c0_29, %c0_30] : memref<4x16x32xbf16, #tpu.memory_space<vmem>>, vector<1x16x32xbf16>
    %39 = vector.shape_cast %38 : vector<1x16x32xbf16> to vector<16x32xbf16>
    %cst_31 = arith.constant dense<0.000000e+00> : vector<16x128xf32>
    %40 = tpu.matmul %39, %37, %cst_31 {dimension_numbers = #tpu.dot_dimension_numbers<[1], [0], [0], [1], [0, 0, 1, 1], [], []>} : vector<16x32xbf16>, vector<32x128xbf16>, vector<16x128xf32> -> vector<16x128xf32>
    %41 = arith.truncf %40 : vector<16x128xf32> to vector<16x128xbf16>
    %c1_32 = arith.constant 1 : index
    %c0_33 = arith.constant 0 : index
    %c0_34 = arith.constant 0 : index
    %42 = vector.load %arg5[%c1_32, %c0_33, %c0_34] : memref<4x16x32xbf16, #tpu.memory_space<vmem>>, vector<1x16x32xbf16>
    %43 = vector.shape_cast %42 : vector<1x16x32xbf16> to vector<16x32xbf16>
    %cst_35 = arith.constant dense<0.000000e+00> : vector<16x128xf32>
    %44 = tpu.matmul %43, %37, %cst_35 {dimension_numbers = #tpu.dot_dimension_numbers<[1], [0], [0], [1], [0, 0, 1, 1], [], []>} : vector<16x32xbf16>, vector<32x128xbf16>, vector<16x128xf32> -> vector<16x128xf32>
    %45 = arith.truncf %44 : vector<16x128xf32> to vector<16x128xbf16>
    %c2_36 = arith.constant 2 : index
    %c0_37 = arith.constant 0 : index
    %c0_38 = arith.constant 0 : index
    %46 = vector.load %arg5[%c2_36, %c0_37, %c0_38] : memref<4x16x32xbf16, #tpu.memory_space<vmem>>, vector<1x16x32xbf16>
    %47 = vector.shape_cast %46 : vector<1x16x32xbf16> to vector<16x32xbf16>
    %cst_39 = arith.constant dense<0.000000e+00> : vector<16x128xf32>
    %48 = tpu.matmul %47, %37, %cst_39 {dimension_numbers = #tpu.dot_dimension_numbers<[1], [0], [0], [1], [0, 0, 1, 1], [], []>} : vector<16x32xbf16>, vector<32x128xbf16>, vector<16x128xf32> -> vector<16x128xf32>
    %49 = arith.truncf %48 : vector<16x128xf32> to vector<16x128xbf16>
    %c3_40 = arith.constant 3 : index
    %c0_41 = arith.constant 0 : index
    %c0_42 = arith.constant 0 : index
    %50 = vector.load %arg5[%c3_40, %c0_41, %c0_42] : memref<4x16x32xbf16, #tpu.memory_space<vmem>>, vector<1x16x32xbf16>
    %51 = vector.shape_cast %50 : vector<1x16x32xbf16> to vector<16x32xbf16>
    %cst_43 = arith.constant dense<0.000000e+00> : vector<16x128xf32>
    %52 = tpu.matmul %51, %37, %cst_43 {dimension_numbers = #tpu.dot_dimension_numbers<[1], [0], [0], [1], [0, 0, 1, 1], [], []>} : vector<16x32xbf16>, vector<32x128xbf16>, vector<16x128xf32> -> vector<16x128xf32>
    %53 = arith.truncf %52 : vector<16x128xf32> to vector<16x128xbf16>
    %54 = tpu.concatenate %41, %45, %49, %53 in 1 : vector<16x128xbf16>, vector<16x128xbf16>, vector<16x128xbf16>, vector<16x128xbf16> -> vector<16x512xbf16>
    %c0_44 = arith.constant 0 : index
    %c0_45 = arith.constant 0 : index
    %55 = vector.load %arg6[%c0_44, %c0_45] : memref<512x128xbf16, #tpu.memory_space<vmem>>, vector<512x128xbf16>
    %cst_46 = arith.constant dense<0.000000e+00> : vector<16x128xf32>
    %56 = tpu.matmul %54, %55, %cst_46 {dimension_numbers = #tpu.dot_dimension_numbers<[1], [0], [0], [1], [0, 0, 1, 1], [], []>} : vector<16x512xbf16>, vector<512x128xbf16>, vector<16x128xf32> -> vector<16x128xf32>
    %c0_47 = arith.constant 0 : index
    %c0_48 = arith.constant 0 : index
    %57 = vector.load %arg7[%c0_47, %c0_48] : memref<1x128xf32, #tpu.memory_space<vmem>>, vector<1x128xf32>
    %58 = vector.broadcast %57 : vector<1x128xf32> to vector<16x128xf32>
    %59 = arith.addf %56, %58 : vector<16x128xf32>
    %cst_49 = arith.constant 0.000000e+00 : f32
    %60 = vector.broadcast %cst_49 : f32 to vector<16x128xf32>
    %61 = arith.maximumf %59, %60 : vector<16x128xf32>
    %62 = arith.truncf %61 : vector<16x128xf32> to vector<16x128xbf16>
    %c0_50 = arith.constant 0 : index
    %c0_51 = arith.constant 0 : index
    %c0_52 = arith.constant 0 : index
    %63 = vector.load %arg8[%c0_50, %c0_51, %c0_52] : memref<4x8x16xbf16, #tpu.memory_space<vmem>>, vector<1x8x16xbf16>
    %64 = vector.shape_cast %63 : vector<1x8x16xbf16> to vector<8x16xbf16>
    %cst_53 = arith.constant dense<0.000000e+00> : vector<8x128xf32>
    %65 = tpu.matmul %64, %62, %cst_53 {dimension_numbers = #tpu.dot_dimension_numbers<[1], [0], [0], [1], [0, 0, 1, 1], [], []>} : vector<8x16xbf16>, vector<16x128xbf16>, vector<8x128xf32> -> vector<8x128xf32>
    %66 = arith.truncf %65 : vector<8x128xf32> to vector<8x128xbf16>
    %c1_54 = arith.constant 1 : index
    %c0_55 = arith.constant 0 : index
    %c0_56 = arith.constant 0 : index
    %67 = vector.load %arg8[%c1_54, %c0_55, %c0_56] : memref<4x8x16xbf16, #tpu.memory_space<vmem>>, vector<1x8x16xbf16>
    %68 = vector.shape_cast %67 : vector<1x8x16xbf16> to vector<8x16xbf16>
    %cst_57 = arith.constant dense<0.000000e+00> : vector<8x128xf32>
    %69 = tpu.matmul %68, %62, %cst_57 {dimension_numbers = #tpu.dot_dimension_numbers<[1], [0], [0], [1], [0, 0, 1, 1], [], []>} : vector<8x16xbf16>, vector<16x128xbf16>, vector<8x128xf32> -> vector<8x128xf32>
    %70 = arith.truncf %69 : vector<8x128xf32> to vector<8x128xbf16>
    %c2_58 = arith.constant 2 : index
    %c0_59 = arith.constant 0 : index
    %c0_60 = arith.constant 0 : index
    %71 = vector.load %arg8[%c2_58, %c0_59, %c0_60] : memref<4x8x16xbf16, #tpu.memory_space<vmem>>, vector<1x8x16xbf16>
    %72 = vector.shape_cast %71 : vector<1x8x16xbf16> to vector<8x16xbf16>
    %cst_61 = arith.constant dense<0.000000e+00> : vector<8x128xf32>
    %73 = tpu.matmul %72, %62, %cst_61 {dimension_numbers = #tpu.dot_dimension_numbers<[1], [0], [0], [1], [0, 0, 1, 1], [], []>} : vector<8x16xbf16>, vector<16x128xbf16>, vector<8x128xf32> -> vector<8x128xf32>
    %74 = arith.truncf %73 : vector<8x128xf32> to vector<8x128xbf16>
    %c3_62 = arith.constant 3 : index
    %c0_63 = arith.constant 0 : index
    %c0_64 = arith.constant 0 : index
    %75 = vector.load %arg8[%c3_62, %c0_63, %c0_64] : memref<4x8x16xbf16, #tpu.memory_space<vmem>>, vector<1x8x16xbf16>
    %76 = vector.shape_cast %75 : vector<1x8x16xbf16> to vector<8x16xbf16>
    %cst_65 = arith.constant dense<0.000000e+00> : vector<8x128xf32>
    %77 = tpu.matmul %76, %62, %cst_65 {dimension_numbers = #tpu.dot_dimension_numbers<[1], [0], [0], [1], [0, 0, 1, 1], [], []>} : vector<8x16xbf16>, vector<16x128xbf16>, vector<8x128xf32> -> vector<8x128xf32>
    %78 = arith.truncf %77 : vector<8x128xf32> to vector<8x128xbf16>
    %79 = tpu.concatenate %66, %70, %74, %78 in 1 : vector<8x128xbf16>, vector<8x128xbf16>, vector<8x128xbf16>, vector<8x128xbf16> -> vector<8x512xbf16>
    %c0_66 = arith.constant 0 : index
    %c0_67 = arith.constant 0 : index
    %80 = vector.load %arg9[%c0_66, %c0_67] : memref<512x128xbf16, #tpu.memory_space<vmem>>, vector<512x128xbf16>
    %cst_68 = arith.constant dense<0.000000e+00> : vector<8x128xf32>
    %81 = tpu.matmul %79, %80, %cst_68 {dimension_numbers = #tpu.dot_dimension_numbers<[1], [0], [0], [1], [0, 0, 1, 1], [], []>} : vector<8x512xbf16>, vector<512x128xbf16>, vector<8x128xf32> -> vector<8x128xf32>
    %c0_69 = arith.constant 0 : index
    %c0_70 = arith.constant 0 : index
    %82 = vector.load %arg10[%c0_69, %c0_70] : memref<1x128xf32, #tpu.memory_space<vmem>>, vector<1x128xf32>
    %83 = vector.broadcast %82 : vector<1x128xf32> to vector<8x128xf32>
    %84 = arith.addf %81, %83 : vector<8x128xf32>
    %cst_71 = arith.constant 0.000000e+00 : f32
    %85 = vector.broadcast %cst_71 : f32 to vector<8x128xf32>
    %86 = arith.maximumf %84, %85 : vector<8x128xf32>
    %c0_72 = arith.constant 0 : index
    %c0_73 = arith.constant 0 : index
    %87 = vector.load %arg11[%c0_72, %c0_73] : memref<2x8xf32, #tpu.memory_space<vmem>>, vector<2x8xf32>
    %cst_74 = arith.constant dense<0.000000e+00> : vector<2x128xf32>
    %88 = tpu.matmul %87, %86, %cst_74 {dimension_numbers = #tpu.dot_dimension_numbers<[1], [0], [0], [1], [0, 0, 1, 1], [], []>} : vector<2x8xf32>, vector<8x128xf32>, vector<2x128xf32> -> vector<2x128xf32>
    %c0_75 = arith.constant 0 : index
    %c0_76 = arith.constant 0 : index
    %89 = vector.load %arg12[%c0_75, %c0_76] : memref<128x128xf32, #tpu.memory_space<vmem>>, vector<128x128xf32>
    %cst_77 = arith.constant dense<0.000000e+00> : vector<2x128xf32>
    %90 = tpu.matmul %88, %89, %cst_77 {dimension_numbers = #tpu.dot_dimension_numbers<[1], [0], [0], [1], [0, 0, 1, 1], [], []>} : vector<2x128xf32>, vector<128x128xf32>, vector<2x128xf32> -> vector<2x128xf32>
    %c0_78 = arith.constant 0 : index
    %c0_79 = arith.constant 0 : index
    %91 = vector.load %arg13[%c0_78, %c0_79] : memref<1x128xf32, #tpu.memory_space<vmem>>, vector<1x128xf32>
    %92 = vector.broadcast %91 : vector<1x128xf32> to vector<2x128xf32>
    %93 = arith.addf %90, %92 : vector<2x128xf32>
    %c0_80 = arith.constant 0 : index
    %c0_81 = arith.constant 0 : index
    %94 = vector.load %arg14[%c0_80, %c0_81] : memref<2x128xf32, #tpu.memory_space<vmem>>, vector<2x128xf32>
    tpu.vector_store %arg14[%c0_80, %c0_81], %93 {strides = array<i32>} : memref<2x128xf32, #tpu.memory_space<vmem>>, vector<2x128xf32>,
    return
  }
  func.func @transform_0(%arg0: i32) -> (i32, i32) {
    %c0_i32 = arith.constant 0 : i32
    %c0_i32_0 = arith.constant 0 : i32
    %c0_i32_1 = arith.constant 0 : i32
    return %c0_i32, %c0_i32_0 : i32, i32
  }
  func.func @transform_1(%arg0: i32) -> (i32, i32, i32) {
    %c0_i32 = arith.constant 0 : i32
    %c0_i32_0 = arith.constant 0 : i32
    %c0_i32_1 = arith.constant 0 : i32
    %c0_i32_2 = arith.constant 0 : i32
    return %c0_i32, %c0_i32_0, %c0_i32_1 : i32, i32, i32
  }
  func.func @transform_2(%arg0: i32) -> (i32, i32) {
    %c0_i32 = arith.constant 0 : i32
    %c0_i32_0 = arith.constant 0 : i32
    %c0_i32_1 = arith.constant 0 : i32
    return %c0_i32, %c0_i32_0 : i32, i32
  }
  func.func @transform_3(%arg0: i32) -> (i32, i32) {
    %c0_i32 = arith.constant 0 : i32
    %c0_i32_0 = arith.constant 0 : i32
    %c0_i32_1 = arith.constant 0 : i32
    return %c0_i32, %c0_i32_0 : i32, i32
  }
  func.func @transform_4(%arg0: i32) -> (i32, i32, i32) {
    %c0_i32 = arith.constant 0 : i32
    %c0_i32_0 = arith.constant 0 : i32
    %c0_i32_1 = arith.constant 0 : i32
    %c0_i32_2 = arith.constant 0 : i32
    return %c0_i32, %c0_i32_0, %c0_i32_1 : i32, i32, i32
  }
  func.func @transform_5(%arg0: i32) -> (i32, i32) {
    %c0_i32 = arith.constant 0 : i32
    %c0_i32_0 = arith.constant 0 : i32
    %c0_i32_1 = arith.constant 0 : i32
    return %c0_i32, %c0_i32_0 : i32, i32
  }
  func.func @transform_6(%arg0: i32) -> (i32, i32) {
    %c0_i32 = arith.constant 0 : i32
    %c0_i32_0 = arith.constant 0 : i32
    %c0_i32_1 = arith.constant 0 : i32
    return %c0_i32, %c0_i32_0 : i32, i32
  }
  func.func @transform_7(%arg0: i32) -> (i32, i32, i32) {
    %c0_i32 = arith.constant 0 : i32
    %c0_i32_0 = arith.constant 0 : i32
    %c0_i32_1 = arith.constant 0 : i32
    %c0_i32_2 = arith.constant 0 : i32
    return %c0_i32, %c0_i32_0, %c0_i32_1 : i32, i32, i32
  }
  func.func @transform_8(%arg0: i32) -> (i32, i32) {
    %c0_i32 = arith.constant 0 : i32
    %c0_i32_0 = arith.constant 0 : i32
    %c0_i32_1 = arith.constant 0 : i32
    return %c0_i32, %c0_i32_0 : i32, i32
  }
  func.func @transform_9(%arg0: i32) -> (i32, i32) {
    %c0_i32 = arith.constant 0 : i32
    %c0_i32_0 = arith.constant 0 : i32
    %c0_i32_1 = arith.constant 0 : i32
    return %c0_i32, %c0_i32_0 : i32, i32
  }
  func.func @transform_10(%arg0: i32) -> (i32, i32) {
    %c0_i32 = arith.constant 0 : i32
    %c0_i32_0 = arith.constant 0 : i32
    %c0_i32_1 = arith.constant 0 : i32
    return %c0_i32, %c0_i32_0 : i32, i32
  }
  func.func @transform_11(%arg0: i32) -> (i32, i32) {
    %c0_i32 = arith.constant 0 : i32
    %c0_i32_0 = arith.constant 0 : i32
    %c0_i32_1 = arith.constant 0 : i32
    return %c0_i32, %c0_i32_0 : i32, i32
  }
  func.func @transform_12(%arg0: i32) -> (i32, i32) {
    %c0_i32 = arith.constant 0 : i32
    %c0_i32_0 = arith.constant 0 : i32
    %c0_i32_1 = arith.constant 0 : i32
    return %c0_i32, %c0_i32_0 : i32, i32
  }
  func.func @transform_13(%arg0: i32) -> (i32, i32) {
    %c0_i32 = arith.constant 0 : i32
    %c0_i32_0 = arith.constant 0 : i32
    %c0_i32_1 = arith.constant 0 : i32
    return %c0_i32, %c0_i32_0 : i32, i32
  }
}

</mosaic_0001>

<bundles_post_ra>
// kernel: style_encoder_forward.1
= control target key start
LH: loop header
LB: loop body
LE: loop exit
PB: predicated region body
PF: predicated region fallthrough
CT: control target
= control target key end

     0   :  { %18 = vsyncpa [#allocation3], 0  ;;  %s3830_s0 = inlined_call_operand.vmem [shape: bf16[32,128], index: 0, kind: input, shape index: {}]   ;;  %s3831_s1 = inlined_call_operand.hbm [shape: bf16[7,32,32], index: 1, kind: input, shape index: {}]   ;;  %s3832_s2 = inlined_call_operand.hbm [shape: bf16[896,128], index: 2, kind: input, shape index: {}]   ;;  %s3833_s3 = inlined_call_operand.vmem [shape: f32[1,128], index: 3, kind: input, shape index: {}]   ;;  %s3834_s4 = inlined_call_operand.vmem [shape: bf16[4,16,32], index: 4, kind: input, shape index: {}]   ;;  %s3835_s5 = inlined_call_operand.vmem [shape: bf16[512,128], index: 5, kind: input, shape index: {}]   ;;  %s3836_s6 = inlined_call_operand.vmem [shape: f32[1,128], index: 6, kind: input, shape index: {}]   ;;  %s3837_s7 = inlined_call_operand.hbm [shape: bf16[4,8,16], index: 7, kind: input, shape index: {}]   ;;  %s3838_s8 = inlined_call_operand.hbm [shape: bf16[512,128], index: 8, kind: input, shape index: {}]   ;;  %s3839_s9 = inlined_call_operand.vmem [shape: f32[1,128], index: 9, kind: input, shape index: {}]   ;;  %s3840_s10 = inlined_call_operand.vmem [shape: f32[2,8], index: 10, kind: input, shape index: {}]   ;;  %s3841_s11 = inlined_call_operand.vmem [shape: f32[128,128], index: 11, kind: input, shape index: {}]   ;;  %s3842_s12 = inlined_call_operand.vmem [shape: f32[1,128], index: 12, kind: input, shape index: {}]   ;;  %s3843_s13 = inlined_call_operand.vmem [shape: f32[2,128], index: 13, kind: output, shape index: {}]  }
   0x1   :  { %19 = vsyncpa [#allocation5], 0 }
   0x2   :  { %20 = vsyncpa [#allocation8], 0  ;;  %s3401_s25 = smov [#allocation4]   ;;  %s3402_s27 = smov [#allocation2]  }
   0x3   :  { %s40_s26 = sshll.u32 %s3401_s25, 4  ;;  %s28_s28 = sshll.u32 %s3402_s27, 4  ;;  %s41_s26 = int_to_ptr.vmem [resolvable:$true] %s40_s26  ;;  %s3480_s28 = int_to_ptr.vmem [resolvable:$true] %s28_s28 }
   0x4   :  { %s3307_s14 = scalar_lea.hbm %s3832_s2, 7168 }
   0x5   :  { %p3308_p0 = scmp.ne.s32.totalorder %s3832_s2, %s3307_s14  ;;  %p3311_p1 = scmp.lt.u32.totalorder %s3307_s14, %s3832_s2 }
   0x7   :  { %p3313_p2 = pnand %p3311_p1, %p3308_p0 }
   0x9   :  { %3316 = shalt.err (!%p3313_p2)
}
   0xa   :  { %s3317_s19 = scalar_lea.vmem %s41_s26, 7168  ;;  %p3322_p4 = scmp.lt.s32.totalorder %s41_s26, %s41_s26 }
   0xb   :  { %p3318_p3 = scmp.ne.s32.totalorder %s41_s26, %s3317_s19  ;;  %p3323_p5 = scmp.lt.s32.totalorder %s3317_s19, %s3317_s19 }
   0xd   :  { %p3324_p6 = por %p3323_p5, %p3322_p4 }
   0xf   :  { %p3325_p7 = pnand %p3324_p6, %p3318_p3 }
  0x11   :  { %3328 = shalt.err (!%p3325_p7)
}
  0x12   :  { %s3403_s20 = smov 64   ;;  %s3404_s21 = smov 4  }
  0x13   :  { %46 = dma.hbm_to_vmem [thread:$0]  %s3832_s2, 7168, %s41_s26, [#allocation5], %s3403_s20, %s3403_s20, %s3404_s21  }
  0x14   :  { %s3329_s27 = scalar_lea.hbm %s3831_s1, 1792 }
  0x15   :  { %p3330_p8 = scmp.ne.s32.totalorder %s3831_s1, %s3329_s27  ;;  %p3333_p9 = scmp.lt.u32.totalorder %s3329_s27, %s3831_s1 }
  0x17   :  { %p3335_p10 = pnand %p3333_p9, %p3330_p8 }
  0x19   :  { %3338 = shalt.err (!%p3335_p10)
}
  0x1a   :  { %s3339_s16 = scalar_lea.vmem %s3480_s28, 1792  ;;  %p3344_p12 = scmp.lt.s32.totalorder %s3480_s28, %s3480_s28 }
  0x1b   :  { %p3340_p11 = scmp.ne.s32.totalorder %s3480_s28, %s3339_s16  ;;  %p3345_p13 = scmp.lt.s32.totalorder %s3339_s16, %s3339_s16 }
  0x1d   :  { %p3346_p0 = por %p3345_p13, %p3344_p12 }
  0x1f   :  { %p3347_p1 = pnand %p3346_p0, %p3340_p11 }
  0x21   :  { %3350 = shalt.err (!%p3347_p1)
}
  0x22   :  { %34 = dma.hbm_to_vmem [thread:$0]  %s3831_s1, 1792, %s3480_s28, [#allocation3], %s3403_s20, %s3403_s20, %s3404_s21  }
  0x23   :  { %s3405_s17 = smov [#allocation6]   ;;  %s3406_s19 = smov [#allocation7]  }
  0x24   :  { %s60_s18 = sshll.u32 %s3405_s17, 4  ;;  %s72_s22 = sshll.u32 %s3406_s19, 4  ;;  %s61_s18 = int_to_ptr.vmem [resolvable:$true] %s60_s18  ;;  %s3517_s22 = int_to_ptr.vmem [resolvable:$true] %s72_s22 }
  0x25   :  { %s3351_s25 = scalar_lea.hbm %s3837_s7, 256 }
  0x26   :  { %p3352_p2 = scmp.ne.s32.totalorder %s3837_s7, %s3351_s25  ;;  %p3355_p3 = scmp.lt.u32.totalorder %s3351_s25, %s3837_s7 }
  0x28   :  { %p3357_p4 = pnand %p3355_p3, %p3352_p2 }
  0x2a   :  { %3360 = shalt.err (!%p3357_p4)
}
  0x2b   :  { %s3361_s1 = scalar_lea.vmem %s61_s18, 256  ;;  %p3366_p6 = scmp.lt.s32.totalorder %s61_s18, %s61_s18 }
  0x2c   :  { %p3362_p5 = scmp.ne.s32.totalorder %s61_s18, %s3361_s1  ;;  %p3367_p7 = scmp.lt.s32.totalorder %s3361_s1, %s3361_s1 }
  0x2e   :  { %p3368_p8 = por %p3367_p7, %p3366_p6 }
  0x30   :  { %p3369_p9 = pnand %p3368_p8, %p3362_p5 }
  0x32   :  { %3372 = shalt.err (!%p3369_p9)
}
  0x33   :  { %66 = dma.hbm_to_vmem [thread:$0]  %s3837_s7, 256, %s61_s18, [#allocation5], %s3403_s20, %s3403_s20, %s3404_s21  }
  0x34   :  { %s3373_s26 = scalar_lea.hbm %s3838_s8, 4096 }
  0x35   :  { %p3374_p10 = scmp.ne.s32.totalorder %s3838_s8, %s3373_s26  ;;  %p3377_p11 = scmp.lt.u32.totalorder %s3373_s26, %s3838_s8 }
  0x37   :  { %p3379_p12 = pnand %p3377_p11, %p3374_p10 }
  0x39   :  { %3382 = shalt.err (!%p3379_p12)
}
  0x3a   :  { %s3383_s25 = scalar_lea.vmem %s3517_s22, 4096  ;;  %p3388_p0 = scmp.lt.s32.totalorder %s3517_s22, %s3517_s22 }
  0x3b   :  { %p3384_p13 = scmp.ne.s32.totalorder %s3517_s22, %s3383_s25  ;;  %p3389_p1 = scmp.lt.s32.totalorder %s3383_s25, %s3383_s25 }
  0x3d   :  { %p3390_p2 = por %p3389_p1, %p3388_p0 }
  0x3f   :  { %p3391_p3 = pnand %p3390_p2, %p3384_p13 }
  0x41   :  { %3394 = shalt.err (!%p3391_p3)
}
  0x42   :  { %78 = dma.hbm_to_vmem [thread:$0]  %s3838_s8, 4096, %s3517_s22, [#allocation8], %s3403_s20, %s3403_s20, %s3404_s21  }
  0x43   :  { %3395 = dma.done.wait [#allocation3], 1792  }
  0x44   :  { %3396 = vsyncadd [#allocation3], 4294965504 }
  0x45   :  { %3397 = dma.done.wait [#allocation5], 7424  }
  0x46   :  { %3398 = vsyncadd [#allocation5], 4294959872 }
  0x47   :  { %3399 = dma.done.wait [#allocation8], 4096  }
  0x48   :  { %3400 = vsyncadd [#allocation8], 4294963200  ;;  %v3557_v0 = vld [vmem:[%s3830_s0] sm:$0xff]   ;;  %v3562_v1 = vld [vmem:[%s3830_s0 + $0x8] sm:$0xff]   ;;  %vm130_vm0 = vcmask 261120   ;;  %vm3408_vm1 = vmmov 0  }
  0x49   :  { %2962 = vmatprep.subr.bf16.mxu0 %v3557_v0  ;;  %v3169_v2 = vld [vmem:[#allocation2] sm:$0xff]   ;;  %2986 = vmatprep.subr.bf16.mxu1 %v3557_v0  ;;  %v3170_v3 = vld [vmem:[#allocation2 + $0x8] sm:$0xff]   ;;  %v3171_v4 = vld [vmem:[#allocation2 + $0x10] sm:$0xff]   ;;  %vm1837_vm2 = vcmask 130048   ;;  %vm2365_vm3 = vcmask 64512  }
  0x4a   :  { %2963 = vmatpush3.bf16.msra.mxu0 %v3557_v0  ;;  %2987 = vmatpush3.bf16.msra.mxu1 %v3557_v0  ;;  %v3173_v5 = vld [vmem:[#allocation2 + $0x30] sm:$0xff]   ;;  %v3174_v6 = vld [vmem:[#allocation2 + $0x38] sm:$0xff]   ;;  %v3175_v9 = vld [vmem:[#allocation2 + $0x20] sm:$0xff]  }
  0x4b   :  { %2964 = vmatprep.subr.bf16.mxu0 %v3562_v1  ;;  %2966 = vmatprep.mubr.msk.bf16.mxu0 %vm130_vm0, %v3169_v2  ;;  %v3179_v7 = vld [vmem:[#allocation2 + $0x50] sm:$0xff]   ;;  %v3172_v8 = vld [vmem:[#allocation2 + $0x18] sm:$0xff]   ;;  %v3176_v14 = vld [vmem:[#allocation2 + $0x28] sm:$0xff]  }
  0x4c   :  { %2988 = vmatprep.subr.bf16.mxu1 %v3562_v1  ;;  %2990 = vmatprep.mubr.msk.bf16.mxu1 %vm130_vm0, %v3173_v5  ;;  %v3180_v10 = vld [vmem:[#allocation2 + $0x58] sm:$0xff]   ;;  %v3183_v11 = vld [vmem:[#allocation4 + $0x40] sm:$0xff]   ;;  %v3188_v16 = vld [vmem:[#allocation4 + $0x50] sm:$0xff]  }
  0x4d   :  { %v3184_v12 = vld [vmem:[#allocation4] sm:$0xff]   ;;  %v3185_v13 = vld [vmem:[#allocation4 + $0x48] sm:$0xff]   ;;  %v3177_v17 = vld [vmem:[#allocation2 + $0x40] sm:$0xff]  }
  0x4e   :  { %2965 = vmatpush3.bf16.msra.mxu0 %v3562_v1  ;;  %2989 = vmatpush3.bf16.msra.mxu1 %v3562_v1  ;;  %v3186_v15 = vld [vmem:[#allocation4 + $0x8] sm:$0xff]   ;;  %v3190_v18 = vld [vmem:[#allocation4 + $0x10] sm:$0xff]   ;;  %v3192_v19 = vld [vmem:[#allocation4 + $0x58] sm:$0xff]  }
  0x4f   :  { %2970 = vmatprep.subr.bf16.mxu0 %v3557_v0  ;;  %3002 = vmatprep.subr.bf16.mxu1 %v3557_v0  ;;  %v3178_v20 = vld [vmem:[#allocation2 + $0x48] sm:$0xff]   ;;  %v3181_v21 = vld [vmem:[#allocation2 + $0x60] sm:$0xff]   ;;  %v3196_v23 = vld [vmem:[#allocation4 + $0x60] sm:$0xff]  }
  0x50   :  { %v3194_v22 = vld [vmem:[#allocation4 + $0x18] sm:$0xff]   ;;  %v3198_v24 = vld [vmem:[#allocation4 + $0x20] sm:$0xff]   ;;  %v3191_v28 = vld [vmem:[#allocation4 + $0xc8] sm:$0xff]  }
  0x51   :  { %2967 = vmatmul.mubr.msk.bf16.vlgmr.msra.gmra.mrb[0].mxu0 %vm130_vm0, %v3170_v3  ;;  %2991 = vmatmul.mubr.msk.bf16.vlgmr.msra.gmra.mrb[0].mxu1 %vm130_vm0, %v3174_v6  ;;  %v3187_v25 = vld [vmem:[#allocation4 + $0xc0] sm:$0xff]   ;;  %v3182_v26 = vld [vmem:[#allocation2 + $0x68] sm:$0xff]   ;;  %v3193_v29 = vld [vmem:[#allocation4 + $0x88] sm:$0xff]  }
  0x52   :  { %2971 = vmatpush3.bf16.msra.mxu0 %v3557_v0  ;;  %2974 = vmatprep.mubr.msk.bf16.mxu0 %vm130_vm0, %v3171_v4  ;;  %v3189_v27 = vld [vmem:[#allocation4 + $0x80] sm:$0xff]   ;;  %v3195_v30 = vld [vmem:[#allocation4 + $0xd0] sm:$0xff]   ;;  %v3199_v32 = vld [vmem:[#allocation4 + $0xd8] sm:$0xff]  }
  0x53   :  { %2972 = vmatprep.subr.bf16.mxu0 %v3562_v1  ;;  %3003 = vmatpush3.bf16.msra.mxu1 %v3557_v0  ;;  %v3197_v31 = vld [vmem:[#allocation4 + $0x90] sm:$0xff]   ;;  %v3200_v33 = vld [vmem:[#allocation4 + $0x68] sm:$0xff]   ;;  %v3201_v34 = vld [vmem:[#allocation4 + $0x98] sm:$0xff]  }
  0x54   :  { %3004 = vmatprep.subr.bf16.mxu1 %v3562_v1  ;;  %3006 = vmatprep.mubr.msk.bf16.mxu1 %vm130_vm0, %v3179_v7  ;;  %v3202_v35 = vld [vmem:[#allocation4 + $0x28] sm:$0xff]   ;;  %v3203_v36 = vld [vmem:[#allocation4 + $0xe0] sm:$0xff]   ;;  %v3204_v37 = vld [vmem:[#allocation4 + $0x70] sm:$0xff]  }
  0x55   :  { %v3205_v38 = vld [vmem:[#allocation4 + $0xa0] sm:$0xff]   ;;  %v3206_v39 = vld [vmem:[#allocation4 + $0x30] sm:$0xff]   ;;  %v3207_v40 = vld [vmem:[#allocation4 + $0xe8] sm:$0xff]  }
  0x56   :  { %2973 = vmatpush3.bf16.msra.mxu0 %v3562_v1  ;;  %v3208_v41 = vld [vmem:[#allocation4 + $0x78] sm:$0xff]   ;;  %v3209_v42 = vld [vmem:[#allocation4 + $0xa8] sm:$0xff]   ;;  %v3211_v44 = vld [vmem:[#allocation4 + $0xf0] sm:$0xff]  }
  0x57   :  { %2978 = vmatprep.subr.bf16.mxu0 %v3557_v0  ;;  %3005 = vmatpush3.bf16.msra.mxu1 %v3562_v1  ;;  %v3210_v43 = vld [vmem:[#allocation4 + $0x38] sm:$0xff]   ;;  %v3212_v45 = vld [vmem:[#allocation4 + $0xb0] sm:$0xff]   ;;  %v3213_v46 = vld [vmem:[#allocation4 + $0x140] sm:$0xff]  }
  0x58   :  { %2741 = vmatprep.subr.bf16.mxu1 %v3183_v11  ;;  %v3215_v47 = vld [vmem:[#allocation4 + $0xf8] sm:$0xff]   ;;  %v3219_v49 = vld [vmem:[#allocation4 + $0x180] sm:$0xff]  }
  0x59   :  { %2975 = vmatmul.mubr.msk.bf16.vlgmr.msra.gmra.mrb[4].mxu0 %vm130_vm0, %v3172_v8  ;;  %v3216_v48 = vld [vmem:[#allocation4 + $0xb8] sm:$0xff]   ;;  %v3214_v6 = vld [vmem:[#allocation4 + $0x100] sm:$0xff]   ;;  %v3217_v8 = vld [vmem:[#allocation4 + $0x148] sm:$0xff]  }
  0x5a   :  { %2979 = vmatpush3.bf16.msra.mxu0 %v3557_v0  ;;  %2982 = vmatprep.mubr.msk.bf16.mxu0 %vm130_vm0, %v3175_v9 }
  0x5b   :  { %2980 = vmatprep.subr.bf16.mxu0 %v3562_v1  ;;  %3007 = vmatmul.mubr.msk.bf16.vlgmr.msra.gmra.mrb[4].mxu1 %vm130_vm0, %v3180_v10 }
  0x5c   :  { %2742 = vmatpush3.bf16.msra.mxu1 %v3184_v12 }
  0x5d   :  { %2743 = vmatprep.subr.bf16.mxu1 %v3185_v13  ;;  %v3218_v13 = vld [vmem:[#allocation4 + $0x108] sm:$0xff]  }
  0x5e   :  { %2981 = vmatpush3.bf16.msra.mxu0 %v3562_v1 }
  0x5f   :  { %2994 = vmatprep.subr.bf16.mxu0 %v3557_v0 }
  0x60   :  { %2744 = vmatpush3.bf16.msra.mxu1 %v3186_v15  ;;  %v3220_v15 = vld [vmem:[#allocation4 + $0x150] sm:$0xff]  }
  0x61   :  { %2983 = vmatmul.mubr.msk.bf16.vlgmr.msra.gmra.mrb[8].mxu0 %vm130_vm0, %v3176_v14  ;;  %2745 = vmatprep.subr.bf16.mxu1 %v3188_v16 }
  0x62   :  { %2995 = vmatpush3.bf16.msra.mxu0 %v3557_v0  ;;  %2998 = vmatprep.mubr.msk.bf16.mxu0 %vm130_vm0, %v3177_v17 }
  0x63   :  { %2996 = vmatprep.subr.bf16.mxu0 %v3562_v1 }
  0x64   :  { %2746 = vmatpush3.bf16.msra.mxu1 %v3190_v18 }
  0x65   :  { %2747 = vmatprep.subr.bf16.mxu1 %v3192_v19 }
  0x66   :  { %2997 = vmatpush3.bf16.msra.mxu0 %v3562_v1 }
  0x67   :  { %3010 = vmatprep.subr.bf16.mxu0 %v3557_v0 }
  0x68   :  { %2748 = vmatpush3.bf16.msra.mxu1 %v3194_v22  ;;  %v3223_v22 = vld [vmem:[#allocation4 + $0x158] sm:$0xff]  }
  0x69   :  { %2999 = vmatmul.mubr.msk.bf16.vlgmr.msra.gmra.mrb[12].mxu0 %vm130_vm0, %v3178_v20  ;;  %2749 = vmatprep.subr.bf16.mxu1 %v3196_v23  ;;  %v3221_v20 = vld [vmem:[#allocation4 + $0x110] sm:$0xff]   ;;  %v3224_v23 = vld [vmem:[#allocation4 + $0x118] sm:$0xff]  }
  0x6a   :  { %3011 = vmatpush3.bf16.msra.mxu0 %v3557_v0  ;;  %3014 = vmatprep.mubr.msk.bf16.mxu0 %vm130_vm0, %v3181_v21  ;;  %v3222_v21 = vld [vmem:[#allocation4 + $0x188] sm:$0xff]  }
  0x6b   :  { %3012 = vmatprep.subr.bf16.mxu0 %v3562_v1 }
  0x6c   :  { %2750 = vmatpush3.bf16.msra.mxu1 %v3198_v24  ;;  %v3225_v24 = vld [vmem:[#allocation4 + $0x190] sm:$0xff]  }
  0x6d   :  { %2751 = vmatprep.subr.bf16.mxu1 %v3200_v33 }
  0x6e   :  { %3013 = vmatpush3.bf16.msra.mxu0 %v3562_v1 }
  0x6f   :  { %2769 = vmatprep.subr.bf16.mxu0 %v3187_v25 }
  0x70   :  { %2752 = vmatpush3.bf16.msra.mxu1 %v3202_v35  ;;  %v3230_v35 = vld [vmem:[#allocation4 + $0x128] sm:$0xff]  }
  0x71   :  { %3015 = vmatmul.mubr.msk.bf16.vlgmr.msra.gmra.mrb[16].mxu0 %vm130_vm0, %v3182_v26  ;;  %2753 = vmatprep.subr.bf16.mxu1 %v3204_v37  ;;  %v3226_v26 = vld [vmem:[#allocation4 + $0x160] sm:$0xff]  }
  0x72   :  { %2770 = vmatpush3.bf16.msra.mxu0 %v3189_v27 }
  0x73   :  { %2771 = vmatprep.subr.bf16.mxu0 %v3191_v28 }
  0x74   :  { %2754 = vmatpush3.bf16.msra.mxu1 %v3206_v39 }
  0x75   :  { %2755 = vmatprep.subr.bf16.mxu1 %v3208_v41 }
  0x76   :  { %2772 = vmatpush3.bf16.msra.mxu0 %v3193_v29 }
  0x77   :  { %2773 = vmatprep.subr.bf16.mxu0 %v3195_v30 }
  0x78   :  { %2756 = vmatpush3.bf16.msra.mxu1 %v3210_v43  ;;  %v3233_v43 = vld [vmem:[#allocation4 + $0x130] sm:$0xff]  }
  0x79   :  { %2797 = vmatprep.subr.bf16.mxu1 %v3213_v46  ;;  %v3235_v46 = vld [vmem:[#allocation4 + $0x178] sm:$0xff]  }
  0x7a   :  { %2774 = vmatpush3.bf16.msra.mxu0 %v3197_v31  ;;  %v3227_v31 = vld [vmem:[#allocation4 + $0x120] sm:$0xff]  }
  0x7b   :  { %2775 = vmatprep.subr.bf16.mxu0 %v3199_v32  ;;  %v3228_v32 = vld [vmem:[#allocation4 + $0x198] sm:$0xff]  }
  0x7e   :  { %2776 = vmatpush3.bf16.msra.mxu0 %v3201_v34  ;;  %v3229_v34 = vld [vmem:[#allocation4 + $0x168] sm:$0xff]  }
  0x7f   :  { %2777 = vmatprep.subr.bf16.mxu0 %v3203_v36  ;;  %v3231_v36 = vld [vmem:[#allocation4 + $0x1a0] sm:$0xff]  }
  0x82   :  { %2778 = vmatpush3.bf16.msra.mxu0 %v3205_v38  ;;  %v3232_v38 = vld [vmem:[#allocation4 + $0x170] sm:$0xff]  }
  0x83   :  { %2779 = vmatprep.subr.bf16.mxu0 %v3207_v40 }
  0x86   :  { %2780 = vmatpush3.bf16.msra.mxu0 %v3209_v42 }
  0x87   :  { %2781 = vmatprep.subr.bf16.mxu0 %v3211_v44  ;;  %v3234_v44 = vld [vmem:[#allocation4 + $0x1a8] sm:$0xff]  }
  0x8a   :  { %2782 = vmatpush3.bf16.msra.mxu0 %v3212_v45 }
  0x8b   :  { %2783 = vmatprep.subr.bf16.mxu0 %v3215_v47  ;;  %v3236_v47 = vld [vmem:[#allocation4 + $0x138] sm:$0xff]  }
  0x8e   :  { %2784 = vmatpush3.bf16.msra.mxu0 %v3216_v48  ;;  %v3237_v48 = vld [vmem:[#allocation4 + $0x1b0] sm:$0xff]  }
  0x8f   :  { %3018 = vmatprep.subr.bf16.mxu0 %v3219_v49 }
 0x124   :  { %v2968_v50 = vpop.f32.mrb[0].mxu0  ;;  %v2992_v51 = vpop.f32.mrb[0].mxu1 }
 0x125   :  { %v171_v52 = vpop.f32.mrb[1].mxu0  ;;  %v387_v53 = vpop.f32.mrb[1].mxu1 }
 0x126   :  { %v2969_v54 = vpop.f32.mrb[2].mxu0  ;;  %v2993_v55 = vpop.f32.mrb[2].mxu1 }
 0x127   :  { %v187_v56 = vpack.c.bf16 %v2969_v54, %v2968_v50  ;;  %v174_v57 = vpop.f32.mrb[3].mxu0  ;;  %v403_v58 = vpack.c.bf16 %v2993_v55, %v2992_v51  ;;  %v390_v59 = vpop.f32.mrb[3].mxu1  ;;  %v3407_v50 = vmov 0.0  }
 0x128   :  { %v186_v60 = vpack.c.bf16 %v174_v57, %v171_v52  ;;  %v402_v61 = vpack.c.bf16 %v390_v59, %v387_v53  ;;  %v2570_v57 = vld [vmem:[%s3833_s3] ss:$0 sm:$0xff] }
 0x12a   :  { %1156 = vmatprep.mubr.bf16.mxu0 %v402_v61 }
 0x12c   :  { %v2976_v62 = vpop.f32.mrb[4].mxu0 }
 0x12d   :  { %v243_v63 = vpop.f32.mrb[5].mxu0 }
 0x12e   :  { %v2977_v0 = vpop.f32.mrb[6].mxu0  ;;  %v3606_v1 = vpop.f32.mrb[4].mxu1 }
 0x12f   :  { %v259_v2 = vpack.c.bf16 %v2977_v0, %v2976_v62  ;;  %v246_v3 = vpop.f32.mrb[7].mxu0  ;;  %v531_v4 = vpop.f32.mrb[5].mxu1 }
 0x130   :  { %v258_v5 = vpack.c.bf16 %v246_v3, %v243_v63  ;;  %v3608_v7 = vpop.f32.mrb[6].mxu1 }
 0x131   :  { %v547_v9 = vpack.c.bf16 %v3608_v7, %v3606_v1  ;;  %v534_v10 = vpop.f32.mrb[7].mxu1 }
 0x132   :  { %1107 = vmatprep.mubr.bf16.mxu1 %v258_v5  ;;  %v546_v11 = vpack.c.bf16 %v534_v10, %v531_v4 }
 0x133   :  { %1108 = vmatmul.mubr.bf16.vlgmr.msra.gmra.mrb[8].mxu1 %v186_v60 }
 0x134   :  { %2798 = vmatpush3.bf16.msra.mxu1 %v3214_v6  ;;  %v2984_v12 = vpop.f32.mrb[8].mxu0  ;;  %1115 = vmatprep.mubr.bf16.mxu1 %v259_v2 }
 0x135   :  { %v315_v14 = vpop.f32.mrb[9].mxu0  ;;  %2799 = vmatprep.subr.bf16.mxu1 %v3217_v8 }
 0x136   :  { %v2985_v16 = vpop.f32.mrb[10].mxu0 }
 0x137   :  { %v331_v17 = vpack.c.bf16 %v2985_v16, %v2984_v12  ;;  %v318_v18 = vpop.f32.mrb[11].mxu0 }
 0x138   :  { %v330_v19 = vpack.c.bf16 %v318_v18, %v315_v14  ;;  %2800 = vmatpush3.bf16.msra.mxu1 %v3218_v13 }
 0x139   :  { %2801 = vmatprep.subr.bf16.mxu1 %v3220_v15 }
 0x13a   :  { %1157 = vmatmul.mubr.bf16.vlgmr.msra.gmra.mrb[20].mxu0 %v330_v19 }
 0x13b   :  { %3019 = vmatpush3.bf16.msra.mxu0 %v3219_v49  ;;  %1116 = vmatmul.mubr.bf16.gmra.mrb[12].mxu1 %v187_v56  ;;  %v3238_v49 = vld [vmem:[#allocation4 + $0x1b8] sm:$0xff]  }
 0x13c   :  { %1164 = vmatprep.mubr.bf16.mxu0 %v403_v58  ;;  %2802 = vmatpush3.bf16.msra.mxu1 %v3221_v20  ;;  %v3000_v25 = vpop.f32.mrb[12].mxu0 }
 0x13d   :  { %3020 = vmatprep.subr.bf16.mxu0 %v3222_v21  ;;  %2803 = vmatprep.subr.bf16.mxu1 %v3223_v22  ;;  %v459_v27 = vpop.f32.mrb[13].mxu0 }
 0x13e   :  { %v3001_v28 = vpop.f32.mrb[14].mxu0  ;;  %1205 = vmatprep.mubr.bf16.mxu1 %v546_v11 }
 0x13f   :  { %3021 = vmatpush3.bf16.msra.mxu0 %v3222_v21  ;;  %v475_v29 = vpack.c.bf16 %v3001_v28, %v3000_v25  ;;  %v462_v30 = vpop.f32.mrb[15].mxu0 }
 0x140   :  { %2804 = vmatpush3.bf16.msra.mxu1 %v3224_v23  ;;  %3022 = vmatprep.subr.bf16.mxu0 %v3225_v24  ;;  %v474_v33 = vpack.c.bf16 %v462_v30, %v459_v27 }
 0x141   :  { %2805 = vmatprep.subr.bf16.mxu1 %v3226_v26 }
 0x142   :  { %1165 = vmatmul.mubr.bf16.gmra.mrb[24].mxu0 %v331_v17 }
 0x143   :  { %3023 = vmatpush3.bf16.msra.mxu0 %v3225_v24 }
 0x144   :  { %2806 = vmatpush3.bf16.msra.mxu1 %v3227_v31  ;;  %3024 = vmatprep.subr.bf16.mxu0 %v3228_v32  ;;  %v3016_v37 = vpop.f32.mrb[16].mxu0 }
 0x145   :  { %2807 = vmatprep.subr.bf16.mxu1 %v3229_v34  ;;  %v603_v39 = vpop.f32.mrb[17].mxu0 }
 0x146   :  { %v3017_v40 = vpop.f32.mrb[18].mxu0 }
 0x147   :  { %3025 = vmatpush3.bf16.msra.mxu0 %v3228_v32  ;;  %v619_v41 = vpack.c.bf16 %v3017_v40, %v3016_v37  ;;  %v606_v42 = vpop.f32.mrb[19].mxu0 }
 0x148   :  { %2808 = vmatpush3.bf16.msra.mxu1 %v3230_v35  ;;  %3026 = vmatprep.subr.bf16.mxu0 %v3231_v36  ;;  %v618_v45 = vpack.c.bf16 %v606_v42, %v603_v39 }
 0x149   :  { %2809 = vmatprep.subr.bf16.mxu1 %v3232_v38 }
 0x14a   :  { %3034 = vmatprep.mubr.bf16.mxu0 %v618_v45 }
 0x14b   :  { %3027 = vmatpush3.bf16.msra.mxu0 %v3231_v36 }
 0x14c   :  { %2810 = vmatpush3.bf16.msra.mxu1 %v3233_v43  ;;  %3028 = vmatprep.subr.bf16.mxu0 %v3234_v44 }
 0x14d   :  { %2811 = vmatprep.subr.bf16.mxu1 %v3235_v46 }
 0x14f   :  { %3029 = vmatpush3.bf16.msra.mxu0 %v3234_v44 }
 0x150   :  { %2812 = vmatpush3.bf16.msra.mxu1 %v3236_v47  ;;  %3030 = vmatprep.subr.bf16.mxu0 %v3237_v48 }
 0x151   :  { %3046 = vmatprep.subr.bf16.mxu1 %v3407_v50 }
 0x153   :  { %1206 = vmatmul.mubr.bf16.vlgmr.msra.gmra.mrb[16].mxu1 %v474_v33  ;;  %3031 = vmatpush3.bf16.msra.mxu0 %v3237_v48 }
 0x154   :  { %1213 = vmatprep.mubr.bf16.mxu1 %v547_v9  ;;  %3032 = vmatprep.subr.bf16.mxu0 %v3238_v49 }
 0x157   :  { %3033 = vmatpush3.bf16.msra.mxu0 %v3238_v49 }
 0x158   :  { %3038 = vmatprep.subr.bf16.mxu0 %v3407_v50 }
 0x15a   :  { %3035 = vmatmul.mubr.bf16.vlgmr.msra.gmra.mrb[28].mxu0 %v619_v41 }
 0x15b   :  { %1214 = vmatmul.mubr.bf16.gmra.mrb[20].mxu1 %v475_v29  ;;  %3042 = vmatprep.mubr.msk.bf16.mxu0 %vm3408_vm1, %v3407_v50 }
 0x15c   :  { %3050 = vmatprep.mubr.msk.bf16.mxu1 %vm3408_vm1, %v3407_v50 }
 0x206   :  { %v2757_v51 = vpop.f32.mrb[8].mxu1 }
 0x207   :  { %v2758_v52 = vpop.f32.mrb[9].mxu1 }
 0x208   :  { %v2759_v53 = vadd.f32 %v2758_v52, %v2757_v51  ;;  %v2760_v54 = vpop.f32.mrb[10].mxu1  ;;  %v3239_v51 = vld [vmem:[%s3834_s4] sm:$0xff]   ;;  %v3240_v52 = vld [vmem:[%s3834_s4 + $0x8] sm:$0xff]  }
 0x209   :  { %v2761_v55 = vpop.f32.mrb[11].mxu1 }
 0x20a   :  { %v2762_v56 = vadd.f32 %v2761_v55, %v2760_v54  ;;  %v1110_v61 = vadd.f32 %v2759_v53, %v2570_v57  ;;  %v3243_v53 = vld [vmem:[%s3835_s5 + $0x40] sm:$0xff]   ;;  %v3241_v55 = vld [vmem:[%s3834_s4 + $0x10] sm:$0xff]  }
 0x20b   :  { %v3248_v54 = vld [vmem:[%s3835_s5 + $0xc0] sm:$0xff]  }
 0x20c   :  { %v1113_v4 = vadd.f32 %v2762_v56, %v2570_v57  ;;  %v3242_v56 = vld [vmem:[%s3834_s4 + $0x18] sm:$0xff]  }
 0x20d   :  { %v2785_v58 = vpop.f32.mrb[20].mxu0 }
 0x20e   :  { %v2763_v59 = vpop.f32.mrb[12].mxu1  ;;  %v2786_v60 = vpop.f32.mrb[21].mxu0 }
 0x20f   :  { %v2787_v62 = vadd.f32 %v2786_v60, %v2785_v58  ;;  %v2764_v63 = vpop.f32.mrb[13].mxu1  ;;  %v2788_v0 = vpop.f32.mrb[22].mxu0  ;;  %v3250_v58 = vld [vmem:[%s3835_s5 + $0x80] sm:$0xff]   ;;  %v3252_v60 = vld [vmem:[%s3835_s5 + $0xc8] sm:$0xff]  }
 0x210   :  { %v2765_v1 = vadd.f32 %v2764_v63, %v2763_v59  ;;  %v2766_v2 = vpop.f32.mrb[14].mxu1  ;;  %v2789_v3 = vpop.f32.mrb[23].mxu0  ;;  %v3245_v59 = vld [vmem:[%s3835_s5 + $0x48] sm:$0xff]   ;;  %v3247_v63 = vld [vmem:[%s3835_s5 + $0x50] sm:$0xff]  }
 0x211   :  { %v1159_v5 = vadd.f32 %v2787_v62, %v1110_v61  ;;  %v2790_v6 = vadd.f32 %v2789_v3, %v2788_v0  ;;  %v2767_v7 = vpop.f32.mrb[15].mxu1  ;;  %v3246_v61 = vld [vmem:[%s3835_s5 + $0x8] sm:$0xff]   ;;  %v3256_v0 = vld [vmem:[%s3835_s5 + $0xd0] sm:$0xff]   ;;  %v3251_v3 = vld [vmem:[%s3835_s5 + $0x58] sm:$0xff]  }
 0x212   :  { %v2768_v8 = vadd.f32 %v2767_v7, %v2766_v2  ;;  %v1118_v12 = vadd.f32 %v2765_v1, %v2570_v57  ;;  %v3254_v62 = vld [vmem:[%s3835_s5 + $0x88] sm:$0xff]   ;;  %v3249_v1 = vld [vmem:[%s3835_s5 + $0x10] sm:$0xff]   ;;  %v3255_v7 = vld [vmem:[%s3835_s5 + $0x60] sm:$0xff]  }
 0x213   :  { %v1162_v9 = vadd.f32 %v2790_v6, %v1113_v4  ;;  %v3258_v2 = vld [vmem:[%s3835_s5 + $0x90] sm:$0xff]   ;;  %v3260_v4 = vld [vmem:[%s3835_s5 + $0xd8] sm:$0xff]  }
 0x214   :  { %v1121_v16 = vadd.f32 %v2768_v8, %v2570_v57  ;;  %v3244_v57 = vld [vmem:[%s3835_s5] sm:$0xff]   ;;  %v3262_v6 = vld [vmem:[%s3835_s5 + $0x98] sm:$0xff]  }
 0x215   :  { %v2791_v10 = vpop.f32.mrb[24].mxu0  ;;  %v3264_v8 = vld [vmem:[%s3835_s5 + $0xe0] sm:$0xff]  }
 0x216   :  { %v2792_v11 = vpop.f32.mrb[25].mxu0 }
 0x217   :  { %v2793_v13 = vadd.f32 %v2792_v11, %v2791_v10  ;;  %v2794_v14 = vpop.f32.mrb[26].mxu0  ;;  %v3266_v10 = vld [vmem:[%s3835_s5 + $0xa0] sm:$0xff]   ;;  %v3259_v11 = vld [vmem:[%s3835_s5 + $0x68] sm:$0xff]  }
 0x218   :  { %v2795_v15 = vpop.f32.mrb[27].mxu0 }
 0x219   :  { %v1167_v17 = vadd.f32 %v2793_v13, %v1118_v12  ;;  %v2796_v18 = vadd.f32 %v2795_v15, %v2794_v14  ;;  %v3261_v12 = vld [vmem:[%s3835_s5 + $0x28] sm:$0xff]   ;;  %v3263_v13 = vld [vmem:[%s3835_s5 + $0x70] sm:$0xff]   ;;  %v3267_v15 = vld [vmem:[%s3835_s5 + $0x78] sm:$0xff]  }
 0x21a   :  { %v3265_v14 = vld [vmem:[%s3835_s5 + $0x30] sm:$0xff]  }
 0x21b   :  { %v1170_v19 = vadd.f32 %v2796_v18, %v1121_v16  ;;  %v3268_v16 = vld [vmem:[%s3835_s5 + $0xe8] sm:$0xff]  }
 0x21c   :  { %v3270_v18 = vld [vmem:[%s3835_s5 + $0xa8] sm:$0xff]  }
 0x226   :  { %v2813_v20 = vpop.f32.mrb[16].mxu1 }
 0x227   :  { %v2814_v21 = vpop.f32.mrb[17].mxu1 }
 0x228   :  { %v2815_v22 = vadd.f32 %v2814_v21, %v2813_v20  ;;  %v2816_v23 = vpop.f32.mrb[18].mxu1  ;;  %v3272_v20 = vld [vmem:[%s3835_s5 + $0xb0] sm:$0xff]   ;;  %v3273_v21 = vld [vmem:[%s3835_s5 + $0xf8] sm:$0xff]  }
 0x229   :  { %v2817_v24 = vpop.f32.mrb[19].mxu1 }
 0x22a   :  { %v2818_v25 = vadd.f32 %v2817_v24, %v2816_v23  ;;  %v1208_v26 = vadd.f32 %v2815_v22, %v1159_v5  ;;  %v3253_v5 = vld [vmem:[%s3835_s5 + $0x18] sm:$0xff]  }
 0x22b   :  { %v3274_v22 = vld [vmem:[%s3835_s5 + $0xb8] sm:$0xff]  }
 0x22c   :  { %v1211_v27 = vadd.f32 %v2818_v25, %v1162_v9  ;;  %v3257_v9 = vld [vmem:[%s3835_s5 + $0x20] sm:$0xff]  }
 0x22d   :  { %v3036_v28 = vpop.f32.mrb[28].mxu0 }
 0x22e   :  { %v2819_v29 = vpop.f32.mrb[20].mxu1  ;;  %v1256_v30 = vpop.f32.mrb[29].mxu0 }
 0x22f   :  { %v1257_v31 = vadd.f32 %v1256_v30, %v1208_v26  ;;  %v2820_v32 = vpop.f32.mrb[21].mxu1  ;;  %v3037_v33 = vpop.f32.mrb[30].mxu0 }
 0x230   :  { %v2821_v34 = vadd.f32 %v2820_v32, %v2819_v29  ;;  %v2822_v35 = vpop.f32.mrb[22].mxu1  ;;  %v1259_v36 = vpop.f32.mrb[31].mxu0 }
 0x231   :  { %v1260_v37 = vadd.f32 %v1259_v36, %v1211_v27  ;;  %v2823_v38 = vpop.f32.mrb[23].mxu1  ;;  %v1271_v41 = vmax.f32 %v1257_v31, 0.0 }
 0x232   :  { %v1216_v39 = vadd.f32 %v2821_v34, %v1167_v17  ;;  %v2824_v40 = vadd.f32 %v2823_v38, %v2822_v35  ;;  %v3269_v17 = vld [vmem:[%s3835_s5 + $0x38] sm:$0xff]  }
 0x233   :  { %v1272_v42 = vmax.f32 %v1260_v37, 0.0 }
 0x234   :  { %v1265_v43 = vadd.f32 %v3036_v28, %v1216_v39  ;;  %v1219_v44 = vadd.f32 %v2824_v40, %v1170_v19  ;;  %v3271_v19 = vld [vmem:[%s3835_s5 + $0xf0] sm:$0xff]  }
 0x235   :  { %v1275_v45 = vpack.c.bf16 %v1272_v42, %v1271_v41 }
 0x236   :  { %v1268_v46 = vadd.f32 %v3037_v33, %v1219_v44  ;;  %v1273_v47 = vmax.f32 %v1265_v43, 0.0 }
 0x237   :  { %3039 = vmatpush3.bf16.msra.mxu0 %v1275_v45  ;;  %3047 = vmatpush3.bf16.msra.mxu1 %v1275_v45 }
 0x238   :  { %v1274_v48 = vmax.f32 %v1268_v46, 0.0  ;;  %3040 = vmatprep.subr.bf16.mxu0 %v3407_v50  ;;  %3048 = vmatprep.subr.bf16.mxu1 %v3407_v50 }
 0x23a   :  { %v1276_v49 = vpack.c.bf16 %v1274_v48, %v1273_v47 }
 0x23c   :  { %3041 = vmatpush3.bf16.msra.mxu0 %v1276_v49  ;;  %3049 = vmatpush3.bf16.msra.mxu1 %v1276_v49 }
 0x23d   :  { %3054 = vmatprep.subr.bf16.mxu0 %v3407_v50  ;;  %3062 = vmatprep.subr.bf16.mxu1 %v3407_v50 }
 0x23f   :  { %3043 = vmatmul.mubr.msk.bf16.vlgmr.msra.gmra.mrb[32].mxu0 %vm130_vm0, %v3239_v51  ;;  %3051 = vmatmul.mubr.msk.bf16.vlgmr.msra.gmra.mrb[24].mxu1 %vm130_vm0, %v3240_v52 }
 0x240   :  { %3055 = vmatpush3.bf16.msra.mxu0 %v1275_v45  ;;  %3063 = vmatpush3.bf16.msra.mxu1 %v1275_v45 }
 0x241   :  { %3056 = vmatprep.subr.bf16.mxu0 %v3407_v50  ;;  %3064 = vmatprep.subr.bf16.mxu1 %v3407_v50 }
 0x242   :  { %3058 = vmatprep.mubr.msk.bf16.mxu0 %vm3408_vm1, %v3407_v50  ;;  %3066 = vmatprep.mubr.msk.bf16.mxu1 %vm3408_vm1, %v3407_v50 }
 0x244   :  { %3057 = vmatpush3.bf16.msra.mxu0 %v1276_v49  ;;  %3065 = vmatpush3.bf16.msra.mxu1 %v1276_v49  ;;  %v2641_v49 = vld [vmem:[%s3836_s6] ss:$0 sm:$0xff] }
 0x245   :  { %2847 = vmatprep.subr.bf16.mxu0 %v3243_v53  ;;  %2869 = vmatprep.subr.bf16.mxu1 %v3248_v54 }
 0x247   :  { %3059 = vmatmul.mubr.msk.bf16.vlgmr.msra.gmra.mrb[36].mxu0 %vm130_vm0, %v3241_v55  ;;  %3067 = vmatmul.mubr.msk.bf16.vlgmr.msra.gmra.mrb[28].mxu1 %vm130_vm0, %v3242_v56 }
 0x248   :  { %2848 = vmatpush3.bf16.msra.mxu0 %v3244_v57  ;;  %2870 = vmatpush3.bf16.msra.mxu1 %v3250_v58 }
 0x249   :  { %2849 = vmatprep.subr.bf16.mxu0 %v3245_v59  ;;  %2871 = vmatprep.subr.bf16.mxu1 %v3252_v60 }
 0x24c   :  { %2850 = vmatpush3.bf16.msra.mxu0 %v3246_v61  ;;  %2872 = vmatpush3.bf16.msra.mxu1 %v3254_v62 }
 0x24d   :  { %2851 = vmatprep.subr.bf16.mxu0 %v3247_v63  ;;  %2873 = vmatprep.subr.bf16.mxu1 %v3256_v0  ;;  %v1836_v0 = vld [vmem:[#allocation6] sm:$0xf] }
 0x250   :  { %2852 = vmatpush3.bf16.msra.mxu0 %v3249_v1  ;;  %2874 = vmatpush3.bf16.msra.mxu1 %v3258_v2  ;;  %v1883_v1 = vld [vmem:[#allocation6 + $0x4] sm:$0xf]  ;;  %v3275_v2 = vld [vmem:[#allocation7 + $0x40] sm:$0xff]  }
 0x251   :  { %2853 = vmatprep.subr.bf16.mxu0 %v3251_v3  ;;  %2875 = vmatprep.subr.bf16.mxu1 %v3260_v4  ;;  %v3280_v3 = vld [vmem:[#allocation7 + $0xc0] sm:$0xff]   ;;  %v1929_v4 = vld [vmem:[#allocation6 + $0x8] sm:$0xf] }
 0x254   :  { %2854 = vmatpush3.bf16.msra.mxu0 %v3253_v5  ;;  %2876 = vmatpush3.bf16.msra.mxu1 %v3262_v6  ;;  %v1975_v5 = vld [vmem:[#allocation6 + $0xc] sm:$0xf]  ;;  %v3276_v6 = vld [vmem:[#allocation7] sm:$0xff]  }
 0x255   :  { %2855 = vmatprep.subr.bf16.mxu0 %v3255_v7  ;;  %2877 = vmatprep.subr.bf16.mxu1 %v3264_v8  ;;  %v3282_v7 = vld [vmem:[#allocation7 + $0x80] sm:$0xff]   ;;  %v3277_v8 = vld [vmem:[#allocation7 + $0x48] sm:$0xff]  }
 0x258   :  { %2856 = vmatpush3.bf16.msra.mxu0 %v3257_v9  ;;  %2878 = vmatpush3.bf16.msra.mxu1 %v3266_v10  ;;  %v3284_v9 = vld [vmem:[#allocation7 + $0xc8] sm:$0xff]  }
 0x259   :  { %2857 = vmatprep.subr.bf16.mxu0 %v3259_v11  ;;  %2879 = vmatprep.subr.bf16.mxu1 %v3268_v16  ;;  %v3278_v10 = vld [vmem:[#allocation7 + $0x8] sm:$0xff]   ;;  %v3283_v16 = vld [vmem:[#allocation7 + $0x58] sm:$0xff]  }
 0x25a   :  { %v3286_v11 = vld [vmem:[#allocation7 + $0x88] sm:$0xff]  }
 0x25c   :  { %2858 = vmatpush3.bf16.msra.mxu0 %v3261_v12  ;;  %2880 = vmatpush3.bf16.msra.mxu1 %v3270_v18  ;;  %v3279_v12 = vld [vmem:[#allocation7 + $0x50] sm:$0xff]   ;;  %v3285_v18 = vld [vmem:[#allocation7 + $0x18] sm:$0xff]  }
 0x25d   :  { %2859 = vmatprep.subr.bf16.mxu0 %v3263_v13  ;;  %2881 = vmatprep.subr.bf16.mxu1 %v3271_v19  ;;  %v3288_v13 = vld [vmem:[#allocation7 + $0xd0] sm:$0xff]   ;;  %v3294_v19 = vld [vmem:[#allocation7 + $0x98] sm:$0xff]  }
 0x260   :  { %2860 = vmatpush3.bf16.msra.mxu0 %v3265_v14  ;;  %2882 = vmatpush3.bf16.msra.mxu1 %v3272_v20  ;;  %v3281_v14 = vld [vmem:[#allocation7 + $0x10] sm:$0xff]   ;;  %v3287_v20 = vld [vmem:[#allocation7 + $0x60] sm:$0xff]  }
 0x261   :  { %2861 = vmatprep.subr.bf16.mxu0 %v3267_v15  ;;  %2883 = vmatprep.subr.bf16.mxu1 %v3273_v21  ;;  %v3290_v15 = vld [vmem:[#allocation7 + $0x90] sm:$0xff]   ;;  %v3296_v21 = vld [vmem:[#allocation7 + $0xe0] sm:$0xff]  }
 0x264   :  { %2862 = vmatpush3.bf16.msra.mxu0 %v3269_v17  ;;  %2884 = vmatpush3.bf16.msra.mxu1 %v3274_v22  ;;  %v3292_v17 = vld [vmem:[#allocation7 + $0xd8] sm:$0xff]   ;;  %v3289_v22 = vld [vmem:[#allocation7 + $0x20] sm:$0xff]  }
 0x265   :  { %3070 = vmatprep.subr.bf16.mxu0 %v3407_v50  ;;  %3076 = vmatprep.subr.bf16.mxu1 %v3407_v50 }
 0x312   :  { %v1321_v23 = vpop.f32.mrb[32].mxu0  ;;  %v1374_v24 = vpop.f32.mrb[24].mxu1 }
 0x313   :  { %v3044_v25 = vpop.f32.mrb[33].mxu0  ;;  %v3052_v26 = vpop.f32.mrb[25].mxu1 }
 0x314   :  { %v1324_v27 = vpop.f32.mrb[34].mxu0  ;;  %v1377_v28 = vpop.f32.mrb[26].mxu1  ;;  %v3293_v25 = vld [vmem:[#allocation7 + $0x28] sm:$0xff]   ;;  %v3295_v26 = vld [vmem:[#allocation7 + $0x70] sm:$0xff]  }
 0x315   :  { %v1328_v29 = vpack.c.bf16 %v1324_v27, %v1321_v23  ;;  %v1381_v30 = vpack.c.bf16 %v1377_v28, %v1374_v24  ;;  %v3045_v31 = vpop.f32.mrb[35].mxu0  ;;  %v3053_v32 = vpop.f32.mrb[27].mxu1  ;;  %v3298_v23 = vld [vmem:[#allocation7 + $0xa0] sm:$0xff]   ;;  %v3291_v24 = vld [vmem:[#allocation7 + $0x68] sm:$0xff]   ;;  %v3297_v27 = vld [vmem:[#allocation7 + $0x30] sm:$0xff]  }
 0x316   :  { %v3299_v28 = vld [vmem:[#allocation7 + $0x78] sm:$0xff]   ;;  %v3302_v31 = vld [vmem:[#allocation7 + $0xa8] sm:$0xff]   ;;  %v3303_v32 = vld [vmem:[#allocation7 + $0xf0] sm:$0xff]  }
 0x317   :  { %1783 = vmatprep.mubr.bf16.mxu0 %v1381_v30  ;;  %v3301_v30 = vld [vmem:[#allocation7 + $0x38] sm:$0xff]  }
 0x318   :  { %1784 = vmatmul.mubr.bf16.vlgmr.msra.gmra.mrb[40].mxu0 %v1328_v29  ;;  %v3300_v29 = vld [vmem:[#allocation7 + $0xe8] sm:$0xff]  }
 0x319   :  { %3072 = vmatprep.mubr.msk.bf16.mxu0 %vm3408_vm1, %v3407_v50 }
 0x31a   :  { %v1427_v33 = vpop.f32.mrb[36].mxu0  ;;  %v1480_v34 = vpop.f32.mrb[28].mxu1 }
 0x31b   :  { %v3060_v35 = vpop.f32.mrb[37].mxu0  ;;  %v3068_v36 = vpop.f32.mrb[29].mxu1 }
 0x31c   :  { %v1430_v37 = vpop.f32.mrb[38].mxu0  ;;  %v1483_v38 = vpop.f32.mrb[30].mxu1  ;;  %v3306_v35 = vld [vmem:[#allocation7 + $0xb8] sm:$0xff]  }
 0x31d   :  { %v1434_v39 = vpack.c.bf16 %v1430_v37, %v1427_v33  ;;  %v1487_v40 = vpack.c.bf16 %v1483_v38, %v1480_v34  ;;  %v3061_v41 = vpop.f32.mrb[39].mxu0  ;;  %v3069_v42 = vpop.f32.mrb[31].mxu1  ;;  %v3304_v33 = vld [vmem:[#allocation7 + $0xb0] sm:$0xff]   ;;  %v3305_v34 = vld [vmem:[#allocation7 + $0xf8] sm:$0xff]  }
 0x31f   :  { %1824 = vmatprep.mubr.bf16.mxu1 %v1487_v40 }
 0x320   :  { %1825 = vmatmul.mubr.bf16.vlgmr.msra.gmra.mrb[32].mxu1 %v1434_v39 }
 0x321   :  { %3078 = vmatprep.mubr.msk.bf16.mxu1 %vm3408_vm1, %v3407_v50 }
 0x3eb   :  { %v2863_v43 = vpop.f32.mrb[40].mxu0 }
 0x3ec   :  { %v2864_v44 = vpop.f32.mrb[41].mxu0 }
 0x3ed   :  { %v2865_v45 = vadd.f32 %v2864_v44, %v2863_v43  ;;  %v2866_v46 = vpop.f32.mrb[42].mxu0 }
 0x3ee   :  { %v2867_v47 = vpop.f32.mrb[43].mxu0 }
 0x3ef   :  { %v2868_v48 = vadd.f32 %v2867_v47, %v2866_v46  ;;  %v1786_v53 = vadd.f32 %v2865_v45, %v2641_v49 }
 0x3f1   :  { %v1789_v57 = vadd.f32 %v2868_v48, %v2641_v49 }
 0x3f3   :  { %v2885_v51 = vpop.f32.mrb[32].mxu1 }
 0x3f4   :  { %v2886_v52 = vpop.f32.mrb[33].mxu1 }
 0x3f5   :  { %v2887_v54 = vadd.f32 %v2886_v52, %v2885_v51  ;;  %v2888_v55 = vpop.f32.mrb[34].mxu1 }
 0x3f6   :  { %v2889_v56 = vpop.f32.mrb[35].mxu1 }
 0x3f7   :  { %v1827_v58 = vadd.f32 %v2887_v54, %v1786_v53  ;;  %v2890_v59 = vadd.f32 %v2889_v56, %v2888_v55 }
 0x3f9   :  { %v1830_v60 = vadd.f32 %v2890_v59, %v1789_v57  ;;  %v1833_v61 = vmax.f32 %v1827_v58, 0.0  ;;  %v2439_v57 = vld [vmem:[%s3841_s11] sm:$0xff]  ;;  %v2440_v58 = vld [vmem:[%s3841_s11 + $0x8] sm:$0xff]  ;;  %v2441_v59 = vld [vmem:[%s3841_s11 + $0x10] sm:$0xff] }
 0x3fb   :  { %v1834_v62 = vmax.f32 %v1830_v60, 0.0  ;;  %v3409_v60 = vmov 0.0|0.0  }
 0x3fd   :  { %v1835_v63 = vpack.c.bf16 %v1834_v62, %v1833_v61  ;;  %v3135_v61 = vpack.c.bf16 %v2440_v58, %v2439_v57  ;;  %v2442_v62 = vld [vmem:[%s3841_s11 + $0x18] sm:$0xff] }
 0x3ff   :  { %3071 = vmatpush3.bf16.msra.mxu0 %v1835_v63  ;;  %3077 = vmatpush3.bf16.msra.mxu1 %v1835_v63 }
 0x400   :  { %3082 = vmatprep.subr.bf16.mxu0 %v3407_v50  ;;  %3088 = vmatprep.subr.bf16.mxu1 %v3407_v50 }
 0x402   :  { %3073 = vmatmul.mubr.msk.bf16.vlgmr.msra.gmra.mrb[44].mxu0 %vm1837_vm2, %v1836_v0  ;;  %3079 = vmatmul.mubr.msk.bf16.vlgmr.msra.gmra.mrb[36].mxu1 %vm1837_vm2, %v1883_v1  ;;  %v2444_v0 = vld [vmem:[%s3841_s11 + $0x28] sm:$0xff] }
 0x403   :  { %3083 = vmatpush3.bf16.msra.mxu0 %v1835_v63  ;;  %3089 = vmatpush3.bf16.msra.mxu1 %v1835_v63  ;;  %v2443_v63 = vld [vmem:[%s3841_s11 + $0x20] sm:$0xff] }
 0x404   :  { %3084 = vmatprep.mubr.msk.bf16.mxu0 %vm3408_vm1, %v3407_v50  ;;  %3090 = vmatprep.mubr.msk.bf16.mxu1 %vm3408_vm1, %v3407_v50  ;;  %v3141_v1 = vpack.c.bf16 %v2444_v0, %v2443_v63 }
 0x405   :  { %2899 = vmatprep.subr.bf16.mxu0 %v3275_v2  ;;  %2921 = vmatprep.subr.bf16.mxu1 %v3280_v3  ;;  %v2445_v2 = vld [vmem:[%s3841_s11 + $0x30] sm:$0xff]  ;;  %v2446_v3 = vld [vmem:[%s3841_s11 + $0x38] sm:$0xff] }
 0x40a   :  { %3085 = vmatmul.mubr.msk.bf16.vlgmr.msra.gmra.mrb[48].mxu0 %vm1837_vm2, %v1929_v4  ;;  %3091 = vmatmul.mubr.msk.bf16.vlgmr.msra.gmra.mrb[40].mxu1 %vm1837_vm2, %v1975_v5  ;;  %v3144_v4 = vpack.c.bf16 %v2446_v3, %v2445_v2  ;;  %v2447_v5 = vld [vmem:[%s3841_s11 + $0x40] sm:$0xff] }
 0x40b   :  { %2900 = vmatpush3.bf16.msra.mxu0 %v3276_v6  ;;  %2922 = vmatpush3.bf16.msra.mxu1 %v3282_v7  ;;  %v2448_v6 = vld [vmem:[%s3841_s11 + $0x48] sm:$0xff] }
 0x40c   :  { %2901 = vmatprep.subr.bf16.mxu0 %v3277_v8  ;;  %2923 = vmatprep.subr.bf16.mxu1 %v3284_v9  ;;  %v3147_v7 = vpack.c.bf16 %v2448_v6, %v2447_v5  ;;  %v2449_v8 = vld [vmem:[%s3841_s11 + $0x50] sm:$0xff]  ;;  %v2450_v9 = vld [vmem:[%s3841_s11 + $0x58] sm:$0xff] }
 0x40f   :  { %2902 = vmatpush3.bf16.msra.mxu0 %v3278_v10  ;;  %2924 = vmatpush3.bf16.msra.mxu1 %v3286_v11  ;;  %v3150_v10 = vpack.c.bf16 %v2450_v9, %v2449_v8  ;;  %v2451_v11 = vld [vmem:[%s3841_s11 + $0x60] sm:$0xff] }
 0x410   :  { %2903 = vmatprep.subr.bf16.mxu0 %v3279_v12  ;;  %2925 = vmatprep.subr.bf16.mxu1 %v3288_v13  ;;  %v2452_v12 = vld [vmem:[%s3841_s11 + $0x68] sm:$0xff] }
 0x411   :  { %v3153_v13 = vpack.c.bf16 %v2452_v12, %v2451_v11 }
 0x413   :  { %2904 = vmatpush3.bf16.msra.mxu0 %v3281_v14  ;;  %2926 = vmatpush3.bf16.msra.mxu1 %v3290_v15  ;;  %v2453_v14 = vld [vmem:[%s3841_s11 + $0x70] sm:$0xff]  ;;  %v2454_v15 = vld [vmem:[%s3841_s11 + $0x78] sm:$0xff] }
 0x414   :  { %2905 = vmatprep.subr.bf16.mxu0 %v3283_v16  ;;  %2927 = vmatprep.subr.bf16.mxu1 %v3292_v17  ;;  %v3156_v16 = vpack.c.bf16 %v2454_v15, %v2453_v14 }
 0x417   :  { %2906 = vmatpush3.bf16.msra.mxu0 %v3285_v18  ;;  %2928 = vmatpush3.bf16.msra.mxu1 %v3294_v19 }
 0x418   :  { %2907 = vmatprep.subr.bf16.mxu0 %v3287_v20  ;;  %2929 = vmatprep.subr.bf16.mxu1 %v3296_v21 }
 0x41b   :  { %2908 = vmatpush3.bf16.msra.mxu0 %v3289_v22  ;;  %2930 = vmatpush3.bf16.msra.mxu1 %v3298_v23  ;;  %v2678_v22 = vld [vmem:[%s3839_s9] ss:$0 sm:$0xff] }
 0x41c   :  { %2909 = vmatprep.subr.bf16.mxu0 %v3291_v24  ;;  %2931 = vmatprep.subr.bf16.mxu1 %v3300_v29 }
 0x41f   :  { %2910 = vmatpush3.bf16.msra.mxu0 %v3293_v25  ;;  %2932 = vmatpush3.bf16.msra.mxu1 %v3302_v31  ;;  %v2364_v31 = vld [vmem:[%s3840_s10] sm:$0x3] }
 0x420   :  { %2911 = vmatprep.subr.bf16.mxu0 %v3295_v26  ;;  %2933 = vmatprep.subr.bf16.mxu1 %v3303_v32 }
 0x423   :  { %2912 = vmatpush3.bf16.msra.mxu0 %v3297_v27  ;;  %2934 = vmatpush3.bf16.msra.mxu1 %v3304_v33 }
 0x424   :  { %2913 = vmatprep.subr.bf16.mxu0 %v3299_v28  ;;  %2935 = vmatprep.subr.bf16.mxu1 %v3305_v34  ;;  %v2712_v34 = vld [vmem:[%s3842_s12] ss:$0 sm:$0xff] }
 0x427   :  { %2914 = vmatpush3.bf16.msra.mxu0 %v3301_v30  ;;  %2936 = vmatpush3.bf16.msra.mxu1 %v3306_v35 }
 0x428   :  { %3094 = vmatprep.subr.mxu0 %v3407_v50  ;;  %3134 = vmatprep.subr.bf16.mxu1 %v3409_v60 }
 0x4d5   :  { %v1875_v36 = vpop.f32.mrb[44].mxu0  ;;  %v1921_v37 = vpop.f32.mrb[36].mxu1 }
 0x4d6   :  { %v1881_v38 = vpack.c.bf16 %v1875_v36, %v1875_v36  ;;  %v1927_v39 = vpack.c.bf16 %v1921_v37, %v1921_v37  ;;  %v3074_v40 = vpop.f32.mrb[45].mxu0  ;;  %v3080_v41 = vpop.f32.mrb[37].mxu1 }
 0x4d7   :  { %v1878_v42 = vpop.f32.mrb[46].mxu0  ;;  %v1924_v43 = vpop.f32.mrb[38].mxu1 }
 0x4d8   :  { %v3075_v44 = vpop.f32.mrb[47].mxu0  ;;  %v3081_v45 = vpop.f32.mrb[39].mxu1  ;;  %2315 = vmatprep.mubr.bf16.mxu0 %v1927_v39 }
 0x4d9   :  { %2316 = vmatmul.mubr.bf16.vlgmr.msra.gmra.mrb[52].mxu0 %v1881_v38 }
 0x4da   :  { %3096 = vmatprep.mubr.msk.f32.mxu0 %vm3408_vm1, %v3407_v50 }
 0x4dd   :  { %v1967_v46 = vpop.f32.mrb[48].mxu0  ;;  %v2013_v47 = vpop.f32.mrb[40].mxu1 }
 0x4de   :  { %v1973_v48 = vpack.c.bf16 %v1967_v46, %v1967_v46  ;;  %v2019_v49 = vpack.c.bf16 %v2013_v47, %v2013_v47  ;;  %v3086_v51 = vpop.f32.mrb[49].mxu0  ;;  %v3092_v52 = vpop.f32.mrb[41].mxu1 }
 0x4df   :  { %v1970_v53 = vpop.f32.mrb[50].mxu0  ;;  %v2016_v54 = vpop.f32.mrb[42].mxu1 }
 0x4e0   :  { %v3087_v55 = vpop.f32.mrb[51].mxu0  ;;  %v3093_v56 = vpop.f32.mrb[43].mxu1  ;;  %2355 = vmatprep.mubr.bf16.mxu1 %v2019_v49 }
 0x4e1   :  { %2356 = vmatmul.mubr.bf16.vlgmr.msra.gmra.mrb[44].mxu1 %v1973_v48 }
 0x4e2   :  { %3131 = vmatprep.mubr.msk.f32.mxu1 %vm3408_vm1, %v3407_v50  ;;  %3136 = vmatpush3.bf16.msra.mxu1 %v3135_v61  ;;  %v3138_v50 = vpack.c.bf16 %v2442_v62, %v2441_v59 }
 0x4e3   :  { %3137 = vmatprep.subr.bf16.mxu1 %v3409_v60 }
 0x4e6   :  { %3139 = vmatpush3.bf16.msra.mxu1 %v3138_v50 }
 0x4e7   :  { %3140 = vmatprep.subr.bf16.mxu1 %v3409_v60 }
 0x4ea   :  { %3142 = vmatpush3.bf16.msra.mxu1 %v3141_v1 }
 0x4eb   :  { %3143 = vmatprep.subr.bf16.mxu1 %v3409_v60 }
 0x4ee   :  { %3145 = vmatpush3.bf16.msra.mxu1 %v3144_v4 }
 0x4ef   :  { %3146 = vmatprep.subr.bf16.mxu1 %v3409_v60 }
 0x4f2   :  { %3148 = vmatpush3.bf16.msra.mxu1 %v3147_v7 }
 0x4f3   :  { %3149 = vmatprep.subr.bf16.mxu1 %v3409_v60 }
 0x4f6   :  { %3151 = vmatpush3.bf16.msra.mxu1 %v3150_v10 }
 0x4f7   :  { %3152 = vmatprep.subr.bf16.mxu1 %v3409_v60 }
 0x4fa   :  { %3154 = vmatpush3.bf16.msra.mxu1 %v3153_v13 }
 0x4fb   :  { %3155 = vmatprep.subr.bf16.mxu1 %v3409_v60 }
 0x4fe   :  { %3157 = vmatpush3.bf16.msra.mxu1 %v3156_v16 }
 0x5ac   :  { %v2915_v17 = vpop.f32.mrb[52].mxu0 }
 0x5ad   :  { %v2916_v18 = vpop.f32.mrb[53].mxu0 }
 0x5ae   :  { %v2917_v19 = vadd.f32 %v2916_v18, %v2915_v17  ;;  %v2918_v20 = vpop.f32.mrb[54].mxu0 }
 0x5af   :  { %v2919_v21 = vpop.f32.mrb[55].mxu0 }
 0x5b0   :  { %v2318_v25 = vadd.f32 %v2917_v19, %v2678_v22 }
 0x5b4   :  { %v2937_v23 = vpop.f32.mrb[44].mxu1 }
 0x5b5   :  { %v2938_v24 = vpop.f32.mrb[45].mxu1 }
 0x5b6   :  { %v2939_v26 = vadd.f32 %v2938_v24, %v2937_v23  ;;  %v2940_v27 = vpop.f32.mrb[46].mxu1 }
 0x5b7   :  { %v2941_v28 = vpop.f32.mrb[47].mxu1 }
 0x5b8   :  { %v2358_v29 = vadd.f32 %v2939_v26, %v2318_v25 }
 0x5ba   :  { %v2363_v30 = vmax.f32 %v2358_v29, 0.0 }
 0x5bc   :  { %3095 = vmatpush3.msra.mxu0 %v2363_v30 }
 0x5bd   :  { %3097 = vmatmul.mubr.msk.f32.vlgmr.msra.gmra.mrb[56].mxu0 %vm2365_vm3, %v2364_v31 }
 0x690   :  { %v2435_v32 = vpop.f32.mrb[56].mxu0 }
 0x691   :  { %v3098_v33 = vpop.f32.mrb[57].mxu0  ;;  %3132 = vmatmul.mubr.f32.vlgmr.msra.gmra.mrb[48].mxu1 %v2435_v32 }
 0x764   :  { %v2528_v35 = vpop.f32.mrb[48].mxu1 }
 0x765   :  { %v2529_v36 = vadd.f32 %v2712_v34, %v2528_v35  ;;  %v3133_v37 = vpop.f32.mrb[49].mxu1 }
 0x767   :  { %2532 = vst [vmem:[%s3843_s13] sm:$0x3] %v2529_v36 }
 0x768   :  { %2537 = vsyncpa [#allocation3], 1 }
 0x769   :  { %2538 = vsyncpa [#allocation5], 1 }
 0x76a   :  { %2539 = vsyncpa [#allocation8], 1 }

</bundles_post_ra>
